<compile_context>
chip_gen: v6e
topology: v6e:2x2x1
jax: 0.10.0
libtpu: 0.0.40
codegen_flags: <defaults>
</compile_context>

<pallas_src>
import jax
import jax.numpy as jnp
from jax.experimental import pallas as pl
from jax.experimental.pallas import tpu as pltpu


# ----------------------------------------------------------------------------
# Kernel body
# ----------------------------------------------------------------------------
def mlp_kernel(x_ref, w1_ref, b1_ref, w2_ref, b2_ref, w3_ref, b3_ref, o_ref):
    # Layer 1: bf16 MXU matmul, f32 accumulation; bias + ReLU in f32.
    h1 = jnp.dot(x_ref[...], w1_ref[...], preferred_element_type=jnp.float32)
    h1 = jnp.maximum(h1 + b1_ref[...], 0.0)
    # Dropout(0.3) == identity in eval mode.
    # Layer 2
    h2 = jnp.dot(h1.astype(w2_ref.dtype), w2_ref[...],
                 preferred_element_type=jnp.float32)
    h2 = jnp.maximum(h2 + b2_ref[...], 0.0)
    # Layer 3 (logits; output columns are lane-padded to a multiple of 128)
    out = jnp.dot(h2.astype(w3_ref.dtype), w3_ref[...],
                  preferred_element_type=jnp.float32)
    o_ref[...] = (out + b3_ref[...]).astype(o_ref.dtype)


# ----------------------------------------------------------------------------
# Helpers
# ----------------------------------------------------------------------------
def _round_up(n, m):
    return ((n + m - 1) // m) * m


def _auto_batch_tile(B):
    # Aim for >=4 grid steps (pipeline overlap + work for both v7x TCs) with
    # sublane-aligned tiles, capped at 512 resident activation rows.
    tb = pl.next_power_of_2(max(pl.cdiv(B, 4), 1))
    return int(max(8, min(512, tb)))


def _mlp_pallas_call(xk, w1k, b1k, w2k, b2k, w3k, b3k, *, tb,
                     single_buffer_weights, vmem_limit, cost):
    B_pad, in_dim = xk.shape
    hidden = w1k.shape[1]
    hidden2 = w2k.shape[1]
    n_out = w3k.shape[1]
    grid = (B_pad // tb,)

    const = lambda i: (0, 0)
    # Weights/biases never change across grid steps -> single-buffer them to
    # halve their VMEM footprint (important on v7x's 64 MiB VMEM).
    wkw = {"pipeline_mode": pl.Buffered(1)} if single_buffer_weights else {}

    in_specs = [
        # activations tiled over the batch axis
        pl.BlockSpec((tb, in_dim), lambda i: (i, 0)),
        # resident weights / biases
        pl.BlockSpec((in_dim, hidden), const, **wkw),
        pl.BlockSpec((1, hidden), const, **wkw),
        pl.BlockSpec((hidden, hidden2), const, **wkw),
        pl.BlockSpec((1, hidden2), const, **wkw),
        pl.BlockSpec((hidden2, n_out), const, **wkw),
        pl.BlockSpec((1, n_out), const, **wkw),
    ]

    return pl.pallas_call(
        mlp_kernel,
        out_shape=jax.ShapeDtypeStruct((B_pad, n_out), jnp.float32),
        grid_spec=pltpu.PrefetchScalarGridSpec(
            num_scalar_prefetch=0,
            grid=grid,
            in_specs=in_specs,
            out_specs=pl.BlockSpec((tb, n_out), lambda i: (i, 0)),
        ),
        compiler_params=pltpu.CompilerParams(
            dimension_semantics=("parallel",),
            vmem_limit_bytes=vmem_limit,
        ),
        cost_estimate=cost,
    )(xk, w1k, b1k, w2k, b2k, w3k, b3k)


# ----------------------------------------------------------------------------
# Public forward
# ----------------------------------------------------------------------------
def mlp_forward(x, params, *, batch_tile=None, compute_dtype=jnp.bfloat16):
    """Fused MLP forward. x: [B, in_dim] float32. Returns [B, n_classes]."""
    w1, b1, w2, b2, w3, b3 = params
    B, in_dim = x.shape
    hidden = w1.shape[1]
    hidden2 = w2.shape[1]
    n_classes = w3.shape[1]

    # --- batch tiling: real tile, sublane-aligned, pad batch to a multiple ---
    tb = _auto_batch_tile(B) if batch_tile is None else int(batch_tile)
    assert tb % 8 == 0, "batch_tile must be a multiple of 8 (sublane constraint)"
    B_pad = _round_up(B, tb)

    # --- lane-pad the classifier head to a multiple of 128 output columns ---
    n_out = _round_up(n_classes, 128)
    if n_out != n_classes:
        w3 = jnp.pad(w3, ((0, 0), (0, n_out - n_classes)))
        b3 = jnp.pad(b3, ((0, 0), (0, n_out - n_classes)))

    # --- bf16 matmul operands; biases stay f32 (f32 epilogue in-kernel) ---
    xk = x.astype(compute_dtype)
    if B_pad != B:
        xk = jnp.pad(xk, ((0, B_pad - B), (0, 0)))
    w1k, w2k, w3k = (w.astype(compute_dtype) for w in (w1, w2, w3))
    b1k, b2k, b3k = (b.astype(jnp.float32) for b in (b1, b2, b3))

    # --- VMEM budget (worst case: double-buffered weights); v7x-safe ---
    wi = jnp.dtype(compute_dtype).itemsize
    weight_bytes = (in_dim * hidden + hidden * hidden2 + hidden2 * n_out) * wi
    bias_bytes = (hidden + hidden2 + n_out) * 4
    act_bytes = 2 * tb * in_dim * wi            # double-buffered input tile
    out_bytes = 2 * tb * n_out * 4              # double-buffered f32 out tile
    live_bytes = tb * (hidden + hidden2 + n_out) * 4   # h1/h2/out live values
    vmem_est = 2 * (weight_bytes + bias_bytes) + act_bytes + out_bytes + live_bytes
    budget = 48 * 1024 * 1024                   # safe on v7x (64 MiB physical)
    if vmem_est > budget:
        raise ValueError(
            f"Estimated VMEM use {vmem_est / 2**20:.1f} MiB exceeds "
            f"{budget / 2**20:.0f} MiB; reduce batch_tile or tile the hidden dim.")
    vmem_limit = int(min(56 * 1024 * 1024, max(32 * 1024 * 1024, 2 * vmem_est)))

    # --- cost estimate so XLA schedules casts/pads/slice around the call ---
    flops = 2 * B_pad * (in_dim * hidden + hidden * hidden2 + hidden2 * n_out)
    bytes_accessed = (B_pad * in_dim * wi + weight_bytes + bias_bytes
                      + B_pad * n_out * 4)
    cost = pl.CostEstimate(flops=flops, transcendentals=0,
                           bytes_accessed=bytes_accessed)

    kwargs = dict(tb=tb, vmem_limit=vmem_limit, cost=cost)
    try:
        out = _mlp_pallas_call(xk, w1k, b1k, w2k, b2k, w3k, b3k,
                               single_buffer_weights=True, **kwargs)
    except Exception:
        # This Pallas version does not accept pl.Buffered(1) on the top-level
        # pipeline; fall back to default double buffering (same numerics).
        out = _mlp_pallas_call(xk, w1k, b1k, w2k, b2k, w3k, b3k,
                               single_buffer_weights=False, **kwargs)

    return out.astype(x.dtype)[:B, :n_classes]


# ----------------------------------------------------------------------------
# Init + reference
# ----------------------------------------------------------------------------
def init_params(key, in_dim, hidden_dim, n_classes, dtype=jnp.float32):
    """Deterministic init mimicking nn.Linear's U(-1/sqrt(fan_in), +1/sqrt(fan_in)).
    Weights are stored transposed vs PyTorch: W has shape [fan_in, fan_out]."""
    dims = [(in_dim, hidden_dim), (hidden_dim, hidden_dim // 2),
            (hidden_dim // 2, n_classes)]
    params = []
    for (fan_in, fan_out) in dims:
        key, kw, kb = jax.random.split(key, 3)
        bound = 1.0 / (fan_in ** 0.5)
        w = jax.random.uniform(kw, (fan_in, fan_out), dtype, -bound, bound)
        b = jax.random.uniform(kb, (1, fan_out), dtype, -bound, bound)
        params += [w, b]
    return tuple(params)


def mlp_reference(x, params, compute_dtype=jnp.bfloat16):
    """Pure-JAX reference with the same compute dtype policy as the kernel."""
    w1, b1, w2, b2, w3, b3 = params
    cd = compute_dtype
    h1 = jnp.dot(x.astype(cd), w1.astype(cd),
                 preferred_element_type=jnp.float32) + b1
    h1 = jnp.maximum(h1, 0.0)
    h2 = jnp.dot(h1.astype(cd), w2.astype(cd),
                 preferred_element_type=jnp.float32) + b2
    h2 = jnp.maximum(h2, 0.0)
    return jnp.dot(h2.astype(cd), w3.astype(cd),
                   preferred_element_type=jnp.float32) + b3


# ----------------------------------------------------------------------------
# Self-test
# ----------------------------------------------------------------------------
if __name__ == "__main__":
    key = jax.random.PRNGKey(0)
    # B=500 exercises both padding paths (batch -> 512, classes 10 -> 128);
    # auto tile = 128 -> grid of 4 "parallel" steps.
    B, in_dim, hidden_dim, n_classes = 500, 128, 256, 10

    kx, kp = jax.random.split(key)
    x = jax.random.normal(kx, (B, in_dim), jnp.float32)
    params = init_params(kp, in_dim, hidden_dim, n_classes)

    out = mlp_forward(x, params)
    out = jax.block_until_ready(out)

    ref = mlp_reference(x, params)
    assert out.shape == (B, n_classes), out.shape
    assert jnp.allclose(out, ref, atol=1e-2, rtol=1e-2), "mismatch vs reference"

    print("KERNEL_OK")
</pallas_src>

<mosaic_0001>
module attributes {stable_mosaic.version = 11 : i64} {
  func.func @mlp_kernel(%arg0: i32, %arg1: memref<128x128xbf16, #tpu.memory_space<vmem>>, %arg2: memref<128x256xbf16, #tpu.memory_space<vmem>>, %arg3: memref<1x256xf32, #tpu.memory_space<vmem>>, %arg4: memref<256x128xbf16, #tpu.memory_space<vmem>>, %arg5: memref<1x128xf32, #tpu.memory_space<vmem>>, %arg6: memref<128x128xbf16, #tpu.memory_space<vmem>>, %arg7: memref<1x128xf32, #tpu.memory_space<vmem>>, %arg8: memref<128x128xf32, #tpu.memory_space<vmem>>) attributes {dimension_semantics = [#tpu.dimension_semantics<parallel>], iteration_bounds = array<i64: 4>, scalar_prefetch = 0 : i64, scratch_operands = 0 : i64, tpu.core_type = #tpu.core_type<tc>, window_params = [{transform_indices = @transform_0, window_bounds = array<i64: 128, 128>}, {pipeline_mode = #tpu.pipeline_mode<synchronous>, transform_indices = @transform_1, window_bounds = array<i64: 128, 256>}, {pipeline_mode = #tpu.pipeline_mode<synchronous>, transform_indices = @transform_2, window_bounds = array<i64: 1, 256>}, {pipeline_mode = #tpu.pipeline_mode<synchronous>, transform_indices = @transform_3, window_bounds = array<i64: 256, 128>}, {pipeline_mode = #tpu.pipeline_mode<synchronous>, transform_indices = @transform_4, window_bounds = array<i64: 1, 128>}, {pipeline_mode = #tpu.pipeline_mode<synchronous>, transform_indices = @transform_5, window_bounds = array<i64: 128, 128>}, {pipeline_mode = #tpu.pipeline_mode<synchronous>, transform_indices = @transform_6, window_bounds = array<i64: 1, 128>}, {transform_indices = @transform_7, window_bounds = array<i64: 128, 128>}]} {
    %c0 = arith.constant 0 : index
    %c0_0 = arith.constant 0 : index
    %0 = vector.load %arg1[%c0, %c0_0] : memref<128x128xbf16, #tpu.memory_space<vmem>>, vector<128x128xbf16>
    %c0_1 = arith.constant 0 : index
    %c0_2 = arith.constant 0 : index
    %1 = vector.load %arg2[%c0_1, %c0_2] : memref<128x256xbf16, #tpu.memory_space<vmem>>, vector<128x256xbf16>
    %cst = arith.constant dense<0.000000e+00> : vector<128x256xf32>
    %2 = tpu.matmul %0, %1, %cst {dimension_numbers = #tpu.dot_dimension_numbers<[1], [0], [0], [1], [0, 0, 1, 1], [], []>} : vector<128x128xbf16>, vector<128x256xbf16>, vector<128x256xf32> -> vector<128x256xf32>
    %c0_3 = arith.constant 0 : index
    %c0_4 = arith.constant 0 : index
    %3 = vector.load %arg3[%c0_3, %c0_4] : memref<1x256xf32, #tpu.memory_space<vmem>>, vector<1x256xf32>
    %4 = vector.broadcast %3 : vector<1x256xf32> to vector<128x256xf32>
    %5 = arith.addf %2, %4 : vector<128x256xf32>
    %cst_5 = arith.constant 0.000000e+00 : f32
    %6 = vector.broadcast %cst_5 : f32 to vector<128x256xf32>
    %7 = arith.maximumf %5, %6 : vector<128x256xf32>
    %8 = arith.truncf %7 : vector<128x256xf32> to vector<128x256xbf16>
    %c0_6 = arith.constant 0 : index
    %c0_7 = arith.constant 0 : index
    %9 = vector.load %arg4[%c0_6, %c0_7] : memref<256x128xbf16, #tpu.memory_space<vmem>>, vector<256x128xbf16>
    %cst_8 = arith.constant dense<0.000000e+00> : vector<128x128xf32>
    %10 = tpu.matmul %8, %9, %cst_8 {dimension_numbers = #tpu.dot_dimension_numbers<[1], [0], [0], [1], [0, 0, 1, 1], [], []>} : vector<128x256xbf16>, vector<256x128xbf16>, vector<128x128xf32> -> vector<128x128xf32>
    %c0_9 = arith.constant 0 : index
    %c0_10 = arith.constant 0 : index
    %11 = vector.load %arg5[%c0_9, %c0_10] : memref<1x128xf32, #tpu.memory_space<vmem>>, vector<1x128xf32>
    %12 = vector.broadcast %11 : vector<1x128xf32> to vector<128x128xf32>
    %13 = arith.addf %10, %12 : vector<128x128xf32>
    %cst_11 = arith.constant 0.000000e+00 : f32
    %14 = vector.broadcast %cst_11 : f32 to vector<128x128xf32>
    %15 = arith.maximumf %13, %14 : vector<128x128xf32>
    %16 = arith.truncf %15 : vector<128x128xf32> to vector<128x128xbf16>
    %c0_12 = arith.constant 0 : index
    %c0_13 = arith.constant 0 : index
    %17 = vector.load %arg6[%c0_12, %c0_13] : memref<128x128xbf16, #tpu.memory_space<vmem>>, vector<128x128xbf16>
    %cst_14 = arith.constant dense<0.000000e+00> : vector<128x128xf32>
    %18 = tpu.matmul %16, %17, %cst_14 {dimension_numbers = #tpu.dot_dimension_numbers<[1], [0], [0], [1], [0, 0, 1, 1], [], []>} : vector<128x128xbf16>, vector<128x128xbf16>, vector<128x128xf32> -> vector<128x128xf32>
    %c0_15 = arith.constant 0 : index
    %c0_16 = arith.constant 0 : index
    %19 = vector.load %arg7[%c0_15, %c0_16] : memref<1x128xf32, #tpu.memory_space<vmem>>, vector<1x128xf32>
    %20 = vector.broadcast %19 : vector<1x128xf32> to vector<128x128xf32>
    %21 = arith.addf %18, %20 : vector<128x128xf32>
    %c0_17 = arith.constant 0 : index
    %c0_18 = arith.constant 0 : index
    %22 = vector.load %arg8[%c0_17, %c0_18] : memref<128x128xf32, #tpu.memory_space<vmem>>, vector<128x128xf32>
    tpu.vector_store %arg8[%c0_17, %c0_18], %21 {strides = array<i32>} : memref<128x128xf32, #tpu.memory_space<vmem>>, vector<128x128xf32>,
    return
  }
  func.func @transform_0(%arg0: i32) -> (i32, i32) {
    %c0_i32 = arith.constant 0 : i32
    %c0_i32_0 = arith.constant 0 : i32
    return %arg0, %c0_i32 : i32, i32
  }
  func.func @transform_1(%arg0: i32) -> (i32, i32) {
    %c0_i32 = arith.constant 0 : i32
    %c0_i32_0 = arith.constant 0 : i32
    %c0_i32_1 = arith.constant 0 : i32
    return %c0_i32, %c0_i32_0 : i32, i32
  }
  func.func @transform_2(%arg0: i32) -> (i32, i32) {
    %c0_i32 = arith.constant 0 : i32
    %c0_i32_0 = arith.constant 0 : i32
    %c0_i32_1 = arith.constant 0 : i32
    return %c0_i32, %c0_i32_0 : i32, i32
  }
  func.func @transform_3(%arg0: i32) -> (i32, i32) {
    %c0_i32 = arith.constant 0 : i32
    %c0_i32_0 = arith.constant 0 : i32
    %c0_i32_1 = arith.constant 0 : i32
    return %c0_i32, %c0_i32_0 : i32, i32
  }
  func.func @transform_4(%arg0: i32) -> (i32, i32) {
    %c0_i32 = arith.constant 0 : i32
    %c0_i32_0 = arith.constant 0 : i32
    %c0_i32_1 = arith.constant 0 : i32
    return %c0_i32, %c0_i32_0 : i32, i32
  }
  func.func @transform_5(%arg0: i32) -> (i32, i32) {
    %c0_i32 = arith.constant 0 : i32
    %c0_i32_0 = arith.constant 0 : i32
    %c0_i32_1 = arith.constant 0 : i32
    return %c0_i32, %c0_i32_0 : i32, i32
  }
  func.func @transform_6(%arg0: i32) -> (i32, i32) {
    %c0_i32 = arith.constant 0 : i32
    %c0_i32_0 = arith.constant 0 : i32
    %c0_i32_1 = arith.constant 0 : i32
    return %c0_i32, %c0_i32_0 : i32, i32
  }
  func.func @transform_7(%arg0: i32) -> (i32, i32) {
    %c0_i32 = arith.constant 0 : i32
    %c0_i32_0 = arith.constant 0 : i32
    return %arg0, %c0_i32 : i32, i32
  }
}

module attributes {stable_mosaic.version = 11 : i64} {
  func.func @mlp_kernel(%arg0: i32, %arg1: memref<128x128xbf16, #tpu.memory_space<vmem>>, %arg2: memref<128x256xbf16, #tpu.memory_space<vmem>>, %arg3: memref<1x256xf32, #tpu.memory_space<vmem>>, %arg4: memref<256x128xbf16, #tpu.memory_space<vmem>>, %arg5: memref<1x128xf32, #tpu.memory_space<vmem>>, %arg6: memref<128x128xbf16, #tpu.memory_space<vmem>>, %arg7: memref<1x128xf32, #tpu.memory_space<vmem>>, %arg8: memref<128x128xf32, #tpu.memory_space<vmem>>) attributes {dimension_semantics = [#tpu.dimension_semantics<parallel>], iteration_bounds = array<i64: 4>, scalar_prefetch = 0 : i64, scratch_operands = 0 : i64, tpu.core_type = #tpu.core_type<tc>, window_params = [{transform_indices = @transform_0, window_bounds = array<i64: 128, 128>}, {pipeline_mode = #tpu.pipeline_mode<synchronous>, transform_indices = @transform_1, window_bounds = array<i64: 128, 256>}, {pipeline_mode = #tpu.pipeline_mode<synchronous>, transform_indices = @transform_2, window_bounds = array<i64: 1, 256>}, {pipeline_mode = #tpu.pipeline_mode<synchronous>, transform_indices = @transform_3, window_bounds = array<i64: 256, 128>}, {pipeline_mode = #tpu.pipeline_mode<synchronous>, transform_indices = @transform_4, window_bounds = array<i64: 1, 128>}, {pipeline_mode = #tpu.pipeline_mode<synchronous>, transform_indices = @transform_5, window_bounds = array<i64: 128, 128>}, {pipeline_mode = #tpu.pipeline_mode<synchronous>, transform_indices = @transform_6, window_bounds = array<i64: 1, 128>}, {transform_indices = @transform_7, window_bounds = array<i64: 128, 128>}]} {
    %c0 = arith.constant 0 : index
    %c0_0 = arith.constant 0 : index
    %0 = vector.load %arg1[%c0, %c0_0] : memref<128x128xbf16, #tpu.memory_space<vmem>>, vector<128x128xbf16>
    %c0_1 = arith.constant 0 : index
    %c0_2 = arith.constant 0 : index
    %1 = vector.load %arg2[%c0_1, %c0_2] : memref<128x256xbf16, #tpu.memory_space<vmem>>, vector<128x256xbf16>
    %cst = arith.constant dense<0.000000e+00> : vector<128x256xf32>
    %2 = tpu.matmul %0, %1, %cst {dimension_numbers = #tpu.dot_dimension_numbers<[1], [0], [0], [1], [0, 0, 1, 1], [], []>} : vector<128x128xbf16>, vector<128x256xbf16>, vector<128x256xf32> -> vector<128x256xf32>
    %c0_3 = arith.constant 0 : index
    %c0_4 = arith.constant 0 : index
    %3 = vector.load %arg3[%c0_3, %c0_4] : memref<1x256xf32, #tpu.memory_space<vmem>>, vector<1x256xf32>
    %4 = vector.broadcast %3 : vector<1x256xf32> to vector<128x256xf32>
    %5 = arith.addf %2, %4 : vector<128x256xf32>
    %cst_5 = arith.constant 0.000000e+00 : f32
    %6 = vector.broadcast %cst_5 : f32 to vector<128x256xf32>
    %7 = arith.maximumf %5, %6 : vector<128x256xf32>
    %8 = arith.truncf %7 : vector<128x256xf32> to vector<128x256xbf16>
    %c0_6 = arith.constant 0 : index
    %c0_7 = arith.constant 0 : index
    %9 = vector.load %arg4[%c0_6, %c0_7] : memref<256x128xbf16, #tpu.memory_space<vmem>>, vector<256x128xbf16>
    %cst_8 = arith.constant dense<0.000000e+00> : vector<128x128xf32>
    %10 = tpu.matmul %8, %9, %cst_8 {dimension_numbers = #tpu.dot_dimension_numbers<[1], [0], [0], [1], [0, 0, 1, 1], [], []>} : vector<128x256xbf16>, vector<256x128xbf16>, vector<128x128xf32> -> vector<128x128xf32>
    %c0_9 = arith.constant 0 : index
    %c0_10 = arith.constant 0 : index
    %11 = vector.load %arg5[%c0_9, %c0_10] : memref<1x128xf32, #tpu.memory_space<vmem>>, vector<1x128xf32>
    %12 = vector.broadcast %11 : vector<1x128xf32> to vector<128x128xf32>
    %13 = arith.addf %10, %12 : vector<128x128xf32>
    %cst_11 = arith.constant 0.000000e+00 : f32
    %14 = vector.broadcast %cst_11 : f32 to vector<128x128xf32>
    %15 = arith.maximumf %13, %14 : vector<128x128xf32>
    %16 = arith.truncf %15 : vector<128x128xf32> to vector<128x128xbf16>
    %c0_12 = arith.constant 0 : index
    %c0_13 = arith.constant 0 : index
    %17 = vector.load %arg6[%c0_12, %c0_13] : memref<128x128xbf16, #tpu.memory_space<vmem>>, vector<128x128xbf16>
    %cst_14 = arith.constant dense<0.000000e+00> : vector<128x128xf32>
    %18 = tpu.matmul %16, %17, %cst_14 {dimension_numbers = #tpu.dot_dimension_numbers<[1], [0], [0], [1], [0, 0, 1, 1], [], []>} : vector<128x128xbf16>, vector<128x128xbf16>, vector<128x128xf32> -> vector<128x128xf32>
    %c0_15 = arith.constant 0 : index
    %c0_16 = arith.constant 0 : index
    %19 = vector.load %arg7[%c0_15, %c0_16] : memref<1x128xf32, #tpu.memory_space<vmem>>, vector<1x128xf32>
    %20 = vector.broadcast %19 : vector<1x128xf32> to vector<128x128xf32>
    %21 = arith.addf %18, %20 : vector<128x128xf32>
    %c0_17 = arith.constant 0 : index
    %c0_18 = arith.constant 0 : index
    %22 = vector.load %arg8[%c0_17, %c0_18] : memref<128x128xf32, #tpu.memory_space<vmem>>, vector<128x128xf32>
    tpu.vector_store %arg8[%c0_17, %c0_18], %21 {strides = array<i32>} : memref<128x128xf32, #tpu.memory_space<vmem>>, vector<128x128xf32>,
    return
  }
  func.func @transform_0(%arg0: i32) -> (i32, i32) {
    %c0_i32 = arith.constant 0 : i32
    %c0_i32_0 = arith.constant 0 : i32
    return %arg0, %c0_i32 : i32, i32
  }
  func.func @transform_1(%arg0: i32) -> (i32, i32) {
    %c0_i32 = arith.constant 0 : i32
    %c0_i32_0 = arith.constant 0 : i32
    %c0_i32_1 = arith.constant 0 : i32
    return %c0_i32, %c0_i32_0 : i32, i32
  }
  func.func @transform_2(%arg0: i32) -> (i32, i32) {
    %c0_i32 = arith.constant 0 : i32
    %c0_i32_0 = arith.constant 0 : i32
    %c0_i32_1 = arith.constant 0 : i32
    return %c0_i32, %c0_i32_0 : i32, i32
  }
  func.func @transform_3(%arg0: i32) -> (i32, i32) {
    %c0_i32 = arith.constant 0 : i32
    %c0_i32_0 = arith.constant 0 : i32
    %c0_i32_1 = arith.constant 0 : i32
    return %c0_i32, %c0_i32_0 : i32, i32
  }
  func.func @transform_4(%arg0: i32) -> (i32, i32) {
    %c0_i32 = arith.constant 0 : i32
    %c0_i32_0 = arith.constant 0 : i32
    %c0_i32_1 = arith.constant 0 : i32
    return %c0_i32, %c0_i32_0 : i32, i32
  }
  func.func @transform_5(%arg0: i32) -> (i32, i32) {
    %c0_i32 = arith.constant 0 : i32
    %c0_i32_0 = arith.constant 0 : i32
    %c0_i32_1 = arith.constant 0 : i32
    return %c0_i32, %c0_i32_0 : i32, i32
  }
  func.func @transform_6(%arg0: i32) -> (i32, i32) {
    %c0_i32 = arith.constant 0 : i32
    %c0_i32_0 = arith.constant 0 : i32
    %c0_i32_1 = arith.constant 0 : i32
    return %c0_i32, %c0_i32_0 : i32, i32
  }
  func.func @transform_7(%arg0: i32) -> (i32, i32) {
    %c0_i32 = arith.constant 0 : i32
    %c0_i32_0 = arith.constant 0 : i32
    return %arg0, %c0_i32 : i32, i32
  }
}

</mosaic_0001>

<bundles_post_ra>
// kernel: tpu_custom_call.1
= control target key start
LH: loop header
LB: loop body
LE: loop exit
PB: predicated region body
PF: predicated region fallthrough
CT: control target
= control target key end

     0   :  { %s2113_s0 = inlined_call_operand.hbm [shape: bf16[512,128], index: 0, kind: input, shape index: {}]   ;;  %s2114_s1 = inlined_call_operand.hbm [shape: bf16[128,256], index: 1, kind: input, shape index: {}]   ;;  %s2115_s2 = inlined_call_operand.vmem [shape: f32[1,256], index: 2, kind: input, shape index: {}]   ;;  %s2116_s3 = inlined_call_operand.hbm [shape: bf16[256,128], index: 3, kind: input, shape index: {}]   ;;  %s2117_s4 = inlined_call_operand.vmem [shape: f32[1,128], index: 4, kind: input, shape index: {}]   ;;  %s2118_s5 = inlined_call_operand.hbm [shape: bf16[128,128], index: 5, kind: input, shape index: {}]   ;;  %s2119_s6 = inlined_call_operand.vmem [shape: f32[1,128], index: 6, kind: input, shape index: {}]   ;;  %s2120_s7 = inlined_call_operand.hbm [shape: f32[512,128], index: 7, kind: output, shape index: {}]  }
   0x1   :  { %2127 = sst [smem:[#allocation15_spill]] %s2114_s1 }
   0x2   :  { %12 = vsyncpa [#allocation3], 0 }
   0x3   :  { %14 = vsyncpa [#allocation3 + $0x1], 0 }
   0x4   :  { %15 = vsyncpa [#allocation6], 0 }
   0x5   :  { %16 = vsyncpa [#allocation9], 0 }
   0x6   :  { %17 = vsyncpa [#allocation4], 0 }
   0x7   :  { %19 = vsyncpa [#allocation4 + $0x1], 0  ;;  %s1805_s24 = smov 0   ;;  %s1807_s25 = smov 0  }
   0x8   :  { %s1809_s26 = smov 0   ;;  %s1811_s27 = smov 0  }
   0x9 LB: > { %s1826_s28 = sadd.s32 4294967295, %s1751_s27   ;;  %s1233_s29 = sadd.s32 4294967294, %s1751_s27   ;;  %s1751_s27 = sphi %s1811_s27, %s2149_s27   ;;  %s1747_s26 = sphi %s1809_s26, %s2148_s26   ;;  %s1743_s25 = sphi %s1807_s25, %s2147_s25   ;;  %s1739_s24 = sphi %s1805_s24, %s2146_s24  }
   0xa   : > { %p45_p0 = scmp.ne.s32.totalorder %s1743_s25, %s1739_s24  ;;  %p2121_p1 = scmp.eq.s32.totalorder %s1826_s28, 0 }
   0xb   : > { %p201_p3 = scmp.eq.s32.totalorder %s1233_s29, 3  ;;  %p1234_p5 = scmp.ge.s32.totalorder %s1751_s27, 1 }
   0xc   : > { %p1835_p4 = por %p2121_p1, %p45_p0  ;;  %p208_p7 = scmp.lt.s32.totalorder %s1751_s27, 5 }
   0xd   : > { %p1840_p6 = por %p201_p3, %p45_p0  ;;  %s1753_s10 = smov [#allocation5]  }
   0xe   : > { %s2128_s30 = scalar_select %p1835_p4, 1, 0 }
   0xf   : > { %s2129_s8 = scalar_select %p1840_p6, 1, 0 }
  0x10   : > { %p1845_p8 = pnand %p1234_p5, %p208_p7  ;;  %s220_s11 = sshll.u32 %s1753_s10, 4  ;;  %s221_s11 = int_to_ptr.vmem [resolvable:$true] %s220_s11 }
  0x11   : > { %s1754_s13 = smov [#allocation7]   ;;  %s1584_s15 = scalar_lea.vmem %s221_s11, 2048 }
  0x12   : > { %s2130_s9 = scalar_select %p1845_p8, 1, 0 }
  0x13   : > { %p1449_p9 = pneg %p1845_p8  ;;  %s236_s14 = sshll.u32 %s1754_s13, 4  ;;  %s237_s14 = int_to_ptr.vmem [resolvable:$true] %s236_s14 }
  0x14   : > { %p1585_p12 = scmp.ne.s32.totalorder %s221_s11, %s1584_s15  ;;  %p1592_p3 = scmp.lt.s32.totalorder %s221_s11, %s221_s11 }
  0x15   : > { %p1853_p10 = pnand %p1449_p9, %p2121_p1  ;;  %p1593_p5 = scmp.lt.s32.totalorder %s1584_s15, %s1584_s15 }
  0x17   : > { %p1575_p11 = pneg %p1853_p10  ;;  %p1594_p7 = por %p1593_p5, %p1592_p3 }
  0x19   : > { %p1587_p13 = pnand %p1585_p12, %p1575_p11 }
  0x1b   : > { %p1588_p0 = pneg %p1587_p13 }
  0x1d   : > { %p1595_p9 = pnand %p1594_p7, %p1588_p0 }
  0x1f   : > { %1598 = shalt.err (!%p1595_p9)
}
  0x20   : > { %s1755_s16 = smov 128   ;;  %s1756_s17 = smov 8  }
  0x21   : > { %s2132_s1 = sld [smem:[#allocation15_spill]]  ;;  %s1610_s20 = scalar_lea.vmem %s237_s14, 2048 }
  0x22   : > { %p1611_p1 = scmp.ne.s32.totalorder %s237_s14, %s1610_s20  ;;  %p1618_p2 = scmp.lt.s32.totalorder %s237_s14, %s237_s14 }
  0x23   : > { %p1619_p6 = scmp.lt.s32.totalorder %s1610_s20, %s1610_s20 }
  0x24   : > { %p1613_p12 = pnand %p1611_p1, %p1575_p11 }
  0x25   : > { %p1620_p3 = por %p1619_p6, %p1618_p2 }
  0x26   : > { %p1614_p13 = pneg %p1613_p12 }
  0x27   : > { %1452 = dma.hbm_to_vmem [thread:$0]  (!%p1853_p10), %s2132_s1, 2048, %s221_s11, [#allocation6], %s1755_s16, %s1755_s16, %s1756_s17  }
  0x28   : > { %p1621_p0 = pnand %p1620_p3, %p1614_p13 }
  0x2a   : > { %1624 = shalt.err (!%p1621_p0)
}
  0x2b   : > { %s2122_s21 = smov 64   ;;  %s2123_s22 = smov 4  }
  0x2c   : > { %1455 = dma.hbm_to_vmem [thread:$0]  (!%p1853_p10), %s2116_s3, 2048, %s237_s14, [#allocation6], %s2122_s21, %s2122_s21, %s2123_s22  }
  0x2d   : > { %s1759_s10 = smov [#allocation8]   ;;  %s1879_s13 = sadd.s32 1, %s1751_s27  }
  0x2e   : > { %s252_s11 = sshll.u32 %s1759_s10, 4  ;;  %s253_s11 = int_to_ptr.vmem [resolvable:$true] %s252_s11 }
  0x2f   : > { %s1636_s15 = scalar_lea.vmem %s253_s11, 1024  ;;  %p1644_p5 = scmp.lt.s32.totalorder %s253_s11, %s253_s11 }
  0x30   : > { %p1637_p1 = scmp.ne.s32.totalorder %s253_s11, %s1636_s15  ;;  %p1645_p7 = scmp.lt.s32.totalorder %s1636_s15, %s1636_s15 }
  0x32   : > { %p1639_p2 = pnand %p1637_p1, %p1575_p11  ;;  %p1646_p9 = por %p1645_p7, %p1644_p5 }
  0x34   : > { %p1640_p6 = pneg %p1639_p2 }
  0x36   : > { %p1647_p12 = pnand %p1646_p9, %p1640_p6 }
  0x38   : > { %1650 = shalt.err (!%p1647_p12)
}
  0x39   : > { %1458 = dma.hbm_to_vmem [thread:$0]  (!%p1853_p10), %s2118_s5, 1024, %s253_s11, [#allocation9], %s2122_s21, %s2122_s21, %s2123_s22  }
  0x3a   : > { %s29_s17 = ssub.s32 %s1751_s27, %s1879_s13  ;;  %s32_s12 = sadd.s32 1, %s1747_s26 }
  0x3b   : > { %p30_p11 = scmp.eq.s32.totalorder %s29_s17, 0  ;;  %p39_p13 = scmp.ne.s32.totalorder %s1747_s26, %s1743_s25 }
  0x3c   : > { %p40_p3 = scmp.eq.s32.totalorder %s1751_s27, 0  ;;  %p1470_p0 = scmp.lt.s32.totalorder %s1751_s27, 4 }
  0x3d   : > { %s1900_s18 = scalar_select %p30_p11, %s1747_s26, %s32_s12  }
  0x3e   : > { %p41_p1 = por %p40_p3, %p39_p13  ;;  %p2133_p2 = scmp.eq.s32.totalorder %s1826_s28, 3 }
  0x3f   : > { %s269_s20 = sand.u32 1, %s1747_s26   ;;  %s1303_s23 = sshll.u32 %s1751_s27, 10 }
  0x40   : > { %p1904_p6 = por %p2133_p2, %p39_p13  ;;  %s1239_s29 = sshll.u32 %s269_s20, 6 }
  0x41   : > { %s1913_s11 = scalar_lea.hbm %s2113_s0, %s1303_s23  ;;  %s273_s14 = scalar_lea.vmem [#allocation2], %s1239_s29 }
  0x42   : > { %s2134_s19 = scalar_select %p1904_p6, 1, 0 }
  0x43   : > { %s280_s16 = sshll.u32 %s273_s14, 4  ;;  %p1915_p10 = pnand %p1470_p0, %p41_p1  ;;  %s1919_s16 = int_to_ptr.vmem [resolvable:$true] %s280_s16 }
  0x44   : > { %s1921_s12 = scalar_lea.sflag [#allocation3], %s269_s20  ;;  %s1651_s21 = scalar_lea.hbm %s1913_s11, 1024 }
  0x45   : > { %p1652_p5 = scmp.ne.s32.totalorder %s1913_s11, %s1651_s21  ;;  %p1653_p7 = pneg %p1915_p10 }
  0x46   : > { %s1656_s29 = scalar_lea.hbm %s2113_s0, 4096  ;;  %p1657_p11 = scmp.lt.s32.totalorder %s1913_s11, %s2113_s0 }
  0x47   : > { %p1654_p9 = pnand %p1653_p7, %p1652_p5  ;;  %p1658_p13 = scmp.lt.s32.totalorder %s1656_s29, %s1651_s21 }
  0x49   : > { %p1655_p12 = pneg %p1654_p9  ;;  %p1659_p3 = por %p1658_p13, %p1657_p11 }
  0x4b   : > { %p1660_p0 = pnand %p1659_p3, %p1655_p12 }
  0x4d   : > { %1663 = shalt.err (!%p1660_p0)
}
  0x4e   : > { %s1664_s20 = scalar_lea.vmem %s1919_s16, 1024  ;;  %s1760_s22 = smov [#allocation2]  }
  0x4f   : > { %p1665_p1 = scmp.ne.s32.totalorder %s1919_s16, %s1664_s20  ;;  %s1669_s1 = sshll.u32 %s1760_s22, 4  ;;  %s1670_s1 = int_to_ptr.vmem [resolvable:$false] %s1669_s1 }
  0x50   : > { %s1671_s23 = scalar_lea.vmem %s1670_s1, 2048  ;;  %p1672_p9 = scmp.lt.s32.totalorder %s1919_s16, %s1670_s1 }
  0x51   : > { %p1667_p2 = pnand %p1665_p1, %p1653_p7  ;;  %p1673_p6 = scmp.lt.s32.totalorder %s1671_s23, %s1664_s20 }
  0x53   : > { %p1668_p5 = pneg %p1667_p2  ;;  %p1674_p4 = por %p1673_p6, %p1672_p9 }
  0x55   : > { %p1675_p8 = pnand %p1674_p4, %p1668_p5 }
  0x57   : > { %1678 = shalt.err (!%p1675_p8)
}
  0x58   : > { %s2136_s21 = smov 4   ;;  %s2137_s10 = smov 64  }
  0x59   : > { %1462 = dma.hbm_to_vmem [thread:$0]  (!%p1915_p10), %s1913_s11, 1024, %s1919_s16, %s1921_s12, %s2137_s10, %s2137_s10, %s2136_s21  }
  0x5a   : > { %p2138_p7 = scmp.ne.s32.totalorder %s2130_s9, 0 }
  0x5b   : > { %s1948_s22 = sand.u32 (!%p2138_p7), 1, %s1743_s25   ;;  %p2139_p4 = scmp.ne.s32.totalorder (!%p2138_p7), %s2128_s30, 0 }
  0x5c   : > { %292 = sbr.rel (%p2138_p7) target bundleno = 822 (0x336), region = 48  ;;  %s1243_s1 = sshll.u32 (!%p2138_p7), %s1948_s22, 6 }
  0x5d   : > { %s295_s29 = scalar_lea.sflag (!%p2138_p7), [#allocation3], %s1948_s22  ;;  %s1952_s15 = scalar_lea.vmem (!%p2138_p7), [#allocation2], %s1243_s1 }
  0x61   : > { %1722 = dma.done.wait (%p2139_p4), %s295_s29, 1024  }
  0x62   : > { %1724 = vsyncadd (%p2139_p4), %s295_s29, 4294966272  ;;  %p2140_p8 = scmp.eq.s32.totalorder %s1826_s28, 0 }
  0x64   : > { %1726 = dma.done.wait (%p2140_p8), [#allocation6], 4096   ;;  %p2141_p6 = pmov %p2140_p8 }
  0x66   : > { %1728 = vsyncadd (%p2141_p6), [#allocation6], 4294963200  ;;  %p2142_p10 = pmov %p2141_p6 }
  0x67   : > { %p2143_p12 = pmov %p2141_p6 }
  0x68   : > { %1730 = dma.done.wait (%p2142_p10), [#allocation9], 1024  }
  0x69   : > { %1732 = vsyncadd (%p2143_p12), [#allocation9], 4294966272  ;;  %v1761_v0 = vmov 0   ;;  %v1517_v1 = vld [vmem:[#allocation5 + $0x74] ss:$8 sps:$4 sm:$0xff]   ;;  %v1553_v19 = vld [vmem:[#allocation7 + $0x68] sm:$0xff]   ;;  %v378_v44 = vlaneseq }
  0x6a   : > { %548 = vmatprep.mubr.bf16.mxu0 %v1761_v0  ;;  %v1519_v2 = vld [vmem:[#allocation5 + $0x70] ss:$8 sps:$4 sm:$0xff]   ;;  %516 = vmatprep.subr.bf16.mxu0 %v1517_v1  ;;  %v1520_v3 = vld [vmem:[#allocation5 + $0x64] ss:$8 sps:$4 sm:$0xff]   ;;  %v1522_v4 = vld [vmem:[#allocation5 + $0x60] ss:$8 sps:$4 sm:$0xff]  }
  0x6b   : > { %517 = vmatpush1.bf16.msra.mxu0 %v1519_v2  ;;  %v1523_v5 = vld [vmem:[#allocation5 + $0x54] ss:$8 sps:$4 sm:$0xff]   ;;  %v1525_v6 = vld [vmem:[#allocation5 + $0x50] ss:$8 sps:$4 sm:$0xff]   ;;  %v1526_v7 = vld [vmem:[#allocation5 + $0x44] ss:$8 sps:$4 sm:$0xff]  }
  0x6c   : > { %518 = vmatprep.subr.bf16.mxu0 %v1520_v3  ;;  %v1528_v8 = vld [vmem:[#allocation5 + $0x40] ss:$8 sps:$4 sm:$0xff]   ;;  %v1529_v9 = vld [vmem:[#allocation5 + $0x34] ss:$8 sps:$4 sm:$0xff]   ;;  %v1531_v10 = vld [vmem:[#allocation5 + $0x30] ss:$8 sps:$4 sm:$0xff]  }
  0x6d   : > { %v1532_v11 = vld [vmem:[#allocation5 + $0x24] ss:$8 sps:$4 sm:$0xff]   ;;  %v1534_v12 = vld [vmem:[#allocation5 + $0x20] ss:$8 sps:$4 sm:$0xff]   ;;  %v1535_v13 = vld [vmem:[#allocation5 + $0x14] ss:$8 sps:$4 sm:$0xff]  }
  0x6e   : > { %v1549_v14 = vld [vmem:[#allocation7 + $0x78] sm:$0xff]   ;;  %v1551_v17 = vld [vmem:[#allocation7 + $0x70] sm:$0xff]   ;;  %v1538_v20 = vld [vmem:[#allocation5 + $0x4] ss:$8 sps:$4 sm:$0xff]   ;;  %v379_v45 = vshrl.u32 %v378_v44, 7  ;;  %s1247_s17 = sshll.u32 %s1948_s22, 7 }
  0x6f   : > { %519 = vmatpush1.bf16.msra.mxu0 %v1522_v4  ;;  %v1550_v15 = vld [vmem:[#allocation7 + $0x38] sm:$0xff]   ;;  %1305 = vmatprep.subr.bf16.mxu1 %v1549_v14  ;;  %v1552_v18 = vld [vmem:[#allocation7 + $0x30] sm:$0xff]   ;;  %v1540_v21 = vld [vmem:[#allocation5] ss:$8 sps:$4 sm:$0xff]   ;;  %s2046_s20 = scalar_lea.vmem [#allocation10], %s1247_s17  ;;  %s1304_s23 = sshll.u32 %s1826_s28, 11 }
  0x70   : > { %520 = vmatprep.subr.bf16.mxu0 %v1523_v5  ;;  %v1537_v16 = vld [vmem:[#allocation5 + $0x10] ss:$8 sps:$4 sm:$0xff]   ;;  %1306 = vmatpush3.bf16.msra.mxu1 %v1550_v15  ;;  %v1554_v22 = vld [vmem:[#allocation7 + $0x28] sm:$0xff]   ;;  %v1555_v23 = vld [vmem:[#allocation7 + $0x60] sm:$0xff]   ;;  %v384_v46 = vsub.s32 1, %v379_v45  ;;  %v380_v47 = vsub.s32 0, %v379_v45  ;;  %s2067_s29 = scalar_lea.hbm %s2120_s7, %s1304_s23 }
  0x71   : > { %1307 = vmatprep.subr.bf16.mxu1 %v1551_v17  ;;  %v1541_v24 = vld [vmem:[%s1952_s15] sm:$0xff]   ;;  %v1557_v26 = vld [vmem:[#allocation7 + $0x58] sm:$0xff]   ;;  %v1542_v28 = vld [vmem:[%s1952_s15 + $0x8] sm:$0xff]   ;;  %s1131_s21 = sshll.u32 %s2046_s20, 4  ;;  %p2144_p13 = scmp.ne.s32.totalorder %s2134_s19, 0  ;;  %s2069_s21 = int_to_ptr.vmem [resolvable:$true] %s1131_s21 }
  0x72   : > { %v1556_v25 = vld [vmem:[#allocation7 + $0x20] sm:$0xff]   ;;  %v1558_v27 = vld [vmem:[#allocation7 + $0x18] sm:$0xff]   ;;  %v1543_v29 = vld [vmem:[%s1952_s15 + $0x10] sm:$0xff]   ;;  %s1679_s28 = scalar_lea.vmem %s2069_s21, 2048  ;;  %s1762_s30 = smov [#allocation10]  }
  0x73   : > { %521 = vmatpush1.bf16.msra.mxu0 %v1525_v6  ;;  %v1544_v30 = vld [vmem:[%s1952_s15 + $0x18] sm:$0xff]   ;;  %v1545_v31 = vld [vmem:[%s1952_s15 + $0x20] sm:$0xff]   ;;  %v1546_v32 = vld [vmem:[%s1952_s15 + $0x28] sm:$0xff]   ;;  %p1680_p11 = scmp.ne.s32.totalorder %s2069_s21, %s1679_s28  ;;  %s1683_s9 = sshll.u32 %s1762_s30, 4  ;;  %s1684_s9 = int_to_ptr.vmem [resolvable:$false] %s1683_s9 }
  0x74   : > { %522 = vmatprep.subr.bf16.mxu0 %v1526_v7  ;;  %1308 = vmatpush3.bf16.msra.mxu1 %v1552_v18  ;;  %v1547_v33 = vld [vmem:[%s1952_s15 + $0x30] sm:$0xff]   ;;  %v1548_v34 = vld [vmem:[%s1952_s15 + $0x38] sm:$0xff]   ;;  %v1561_v37 = vld [vmem:[#allocation7 + $0x48] sm:$0xff]   ;;  %s1118_s15 = scalar_lea.sflag [#allocation4], %s1948_s22  ;;  %s1685_s11 = scalar_lea.vmem %s1684_s9, 4096 }
  0x75   : > { %1309 = vmatprep.subr.bf16.mxu1 %v1553_v19  ;;  %v1559_v35 = vld [vmem:[#allocation7 + $0x50] sm:$0xff]   ;;  %v1562_v38 = vld [vmem:[#allocation7 + $0x8] sm:$0xff]   ;;  %v1563_v39 = vld [vmem:[#allocation7 + $0x40] sm:$0xff]   ;;  %p1681_p3 = pnand %p1680_p11, %p2144_p13  ;;  %p1686_p1 = scmp.lt.s32.totalorder %s2069_s21, %s1684_s9 }
  0x76   : > { %v1560_v36 = vld [vmem:[#allocation7 + $0x10] sm:$0xff]   ;;  %v1564_v40 = vld [vmem:[#allocation7] sm:$0xff]   ;;  %v1565_v41 = vld [vmem:[#allocation8 + $0x38] sm:$0xff]   ;;  %p1687_p2 = scmp.lt.s32.totalorder %s1685_s11, %s1679_s28 }
  0x77   : > { %523 = vmatpush1.bf16.msra.mxu0 %v1528_v8  ;;  %v1566_v42 = vld [vmem:[#allocation8 + $0x30] sm:$0xff]   ;;  %v1567_v43 = vld [vmem:[#allocation8 + $0x28] sm:$0xff]   ;;  %v376_v48 = vld [vmem:[%s2115_s2] sm:$0x3]  ;;  %p1682_p0 = pneg %p1681_p3 }
  0x78   : > { %524 = vmatprep.subr.bf16.mxu0 %v1529_v9  ;;  %1310 = vmatpush3.bf16.msra.mxu1 %v1554_v22  ;;  %v1985_v50 = vrot.slane %v376_v48, %v384_v46  ;;  %v1987_v51 = vrot.slane %v376_v48, %v380_v47  ;;  %p1688_p5 = por %p1687_p2, %p1686_p1 }
  0x79   : > { %1311 = vmatprep.subr.bf16.mxu1 %v1555_v23 }
  0x7a   : > { %p1689_p9 = pnand %p1688_p5, %p1682_p0 }
  0x7b   : > { %525 = vmatpush1.bf16.msra.mxu0 %v1531_v10 }
  0x7c   : > { %526 = vmatprep.subr.bf16.mxu0 %v1532_v11  ;;  %1312 = vmatpush3.bf16.msra.mxu1 %v1556_v25 }
  0x7d   : > { %1313 = vmatprep.subr.bf16.mxu1 %v1557_v26 }
  0x7f   : > { %527 = vmatpush1.bf16.msra.mxu0 %v1534_v12 }
  0x80   : > { %528 = vmatprep.subr.bf16.mxu0 %v1535_v13  ;;  %1314 = vmatpush3.bf16.msra.mxu1 %v1558_v27 }
  0x81   : > { %1315 = vmatprep.subr.bf16.mxu1 %v1559_v35 }
  0x83   : > { %529 = vmatpush1.bf16.msra.mxu0 %v1537_v16 }
  0x84   : > { %530 = vmatprep.subr.bf16.mxu0 %v1538_v20  ;;  %1316 = vmatpush3.bf16.msra.mxu1 %v1560_v36 }
  0x85   : > { %1317 = vmatprep.subr.bf16.mxu1 %v1561_v37 }
  0x87   : > { %531 = vmatpush1.bf16.msra.mxu0 %v1540_v21 }
  0x88   : > { %1318 = vmatpush3.bf16.msra.mxu1 %v1562_v38  ;;  %1385 = vmatprep.subr.bf16.mxu0 %v1565_v41 }
  0x89   : > { %1319 = vmatprep.subr.bf16.mxu1 %v1563_v39 }
  0x8a   : > { %549 = vmatmul.mubr.bf16.vlgmr.msra.gmra.mxu0 %v1541_v24 }
  0x8b   : > { %558 = vmatprep.mubr.bf16.mxu0 %v1761_v0  ;;  %1386 = vmatpush3.bf16.msra.mxu0 %v1565_v41 }
  0x8c   : > { %1320 = vmatpush3.bf16.msra.mxu1 %v1564_v40  ;;  %1387 = vmatprep.subr.bf16.mxu0 %v1566_v42 }
  0x8d   : > { %1417 = vmatprep.subr.bf16.mxu1 %v1565_v41 }
  0x8f   : > { %1388 = vmatpush3.bf16.msra.mxu0 %v1566_v42 }
  0x90   : > { %1389 = vmatprep.subr.bf16.mxu0 %v1567_v43 }
  0x92   : > { %559 = vmatmul.mubr.bf16.gmra.mxu0 %v1542_v28 }
  0x93   : > { %568 = vmatprep.mubr.bf16.mxu0 %v1761_v0  ;;  %1390 = vmatpush3.bf16.msra.mxu0 %v1567_v43 }
  0x9a   : > { %569 = vmatmul.mubr.bf16.gmra.mxu0 %v1543_v29 }
  0x9b   : > { %578 = vmatprep.mubr.bf16.mxu0 %v1761_v0 }
  0xa2   : > { %579 = vmatmul.mubr.bf16.gmra.mxu0 %v1544_v30 }
  0xa3   : > { %588 = vmatprep.mubr.bf16.mxu0 %v1761_v0 }
  0xaa   : > { %589 = vmatmul.mubr.bf16.gmra.mxu0 %v1545_v31 }
  0xab   : > { %598 = vmatprep.mubr.bf16.mxu0 %v1761_v0 }
  0xb2   : > { %599 = vmatmul.mubr.bf16.gmra.mxu0 %v1546_v32 }
  0xb3   : > { %608 = vmatprep.mubr.bf16.mxu0 %v1761_v0 }
  0xba   : > { %609 = vmatmul.mubr.bf16.gmra.mxu0 %v1547_v33 }
  0xbb   : > { %618 = vmatprep.mubr.bf16.mxu0 %v1761_v0 }
  0xc2   : > { %619 = vmatmul.mubr.bf16.gmra.mxu0 %v1548_v34 }
 0x14a   : > { %v550_v49 = vpop.f32.mrf.mxu0 }
 0x14b   : > { %v551_v56 = vadd.f32 %v550_v49, %v1987_v51 }
 0x14c   : > { %v552_v52 = vpop.f32.mrf.mxu0 }
 0x14d   : > { %v553_v54 = vadd.f32 %v552_v52, %v1985_v50  ;;  %v629_v63 = vmax.f32 %v551_v56, 0.0 }
 0x14e   : > { %v554_v53 = vpop.f32.mrf.mxu0 }
 0x14f   : > { %v555_v55 = vadd.f32 %v554_v53, %v1987_v51  ;;  %v630_v61 = vmax.f32 %v553_v54, 0.0 }
 0x150   : > { %v556_v57 = vpop.f32.mrf.mxu0 }
 0x151   : > { %v557_v58 = vadd.f32 %v556_v57, %v1985_v50  ;;  %v631_v59 = vmax.f32 %v555_v55, 0.0 }
 0x152   : > { %v560_v60 = vpop.f32.mrf.mxu0 }
 0x153   : > { %v632_v62 = vmax.f32 %v557_v58, 0.0  ;;  %v661_v2 = vpack.c.bf16 %v631_v59, %v629_v63  ;;  %v561_v6 = vadd.f32 %v560_v60, %v1987_v51 }
 0x154   : > { %v562_v0 = vpop.f32.mrf.mxu0 }
 0x155   : > { %v662_v1 = vpack.c.bf16 %v632_v62, %v630_v61  ;;  %v563_v4 = vadd.f32 %v562_v0, %v1985_v50  ;;  %v633_v13 = vmax.f32 %v561_v6, 0.0 }
 0x156   : > { %v564_v3 = vpop.f32.mrf.mxu0 }
 0x157   : > { %v565_v5 = vadd.f32 %v564_v3, %v1987_v51  ;;  %844 = vmatprep.mubr.bf16.mxu1 %v662_v1  ;;  %v634_v11 = vmax.f32 %v563_v4, 0.0 }
 0x158   : > { %v566_v7 = vpop.f32.mrf.mxu0  ;;  %845 = vmatmul.mubr.bf16.vlgmr.msra.gmra.mxu1 %v661_v2 }
 0x159   : > { %v567_v8 = vadd.f32 %v566_v7, %v1985_v50  ;;  %1425 = vmatpush3.bf16.msra.mxu1 %v1565_v41  ;;  %v635_v9 = vmax.f32 %v565_v5, 0.0 }
 0x15a   : > { %v570_v10 = vpop.f32.mrf.mxu0  ;;  %1418 = vmatprep.subr.bf16.mxu1 %v1566_v42 }
 0x15b   : > { %v636_v12 = vmax.f32 %v567_v8, 0.0  ;;  %v663_v16 = vpack.c.bf16 %v635_v9, %v633_v13  ;;  %v571_v20 = vadd.f32 %v570_v10, %v1987_v51 }
 0x15c   : > { %v572_v14 = vpop.f32.mrf.mxu0 }
 0x15d   : > { %v664_v15 = vpack.c.bf16 %v636_v12, %v634_v11  ;;  %1426 = vmatpush3.bf16.msra.mxu1 %v1566_v42  ;;  %v573_v18 = vadd.f32 %v572_v14, %v1985_v50  ;;  %v637_v27 = vmax.f32 %v571_v20, 0.0 }
 0x15e   : > { %v574_v17 = vpop.f32.mrf.mxu0  ;;  %1419 = vmatprep.subr.bf16.mxu1 %v1567_v43 }
 0x15f   : > { %v575_v19 = vadd.f32 %v574_v17, %v1987_v51  ;;  %852 = vmatprep.mubr.bf16.mxu1 %v664_v15  ;;  %v638_v25 = vmax.f32 %v573_v18, 0.0 }
 0x160   : > { %v576_v21 = vpop.f32.mrf.mxu0  ;;  %853 = vmatmul.mubr.bf16.gmra.mxu1 %v663_v16 }
 0x161   : > { %v577_v22 = vadd.f32 %v576_v21, %v1985_v50  ;;  %1427 = vmatpush3.bf16.msra.mxu1 %v1567_v43  ;;  %v639_v23 = vmax.f32 %v575_v19, 0.0 }
 0x162   : > { %v580_v24 = vpop.f32.mrf.mxu0 }
 0x163   : > { %v640_v26 = vmax.f32 %v577_v22, 0.0  ;;  %v665_v30 = vpack.c.bf16 %v639_v23, %v637_v27  ;;  %v581_v34 = vadd.f32 %v580_v24, %v1987_v51 }
 0x164   : > { %v582_v28 = vpop.f32.mrf.mxu0 }
 0x165   : > { %v666_v29 = vpack.c.bf16 %v640_v26, %v638_v25  ;;  %v583_v32 = vadd.f32 %v582_v28, %v1985_v50  ;;  %v641_v41 = vmax.f32 %v581_v34, 0.0 }
 0x166   : > { %v584_v31 = vpop.f32.mrf.mxu0 }
 0x167   : > { %v585_v33 = vadd.f32 %v584_v31, %v1987_v51  ;;  %860 = vmatprep.mubr.bf16.mxu1 %v666_v29  ;;  %v642_v39 = vmax.f32 %v583_v32, 0.0 }
 0x168   : > { %v586_v35 = vpop.f32.mrf.mxu0  ;;  %861 = vmatmul.mubr.bf16.gmra.mxu1 %v665_v30 }
 0x169   : > { %v587_v36 = vadd.f32 %v586_v35, %v1985_v50  ;;  %v643_v37 = vmax.f32 %v585_v33, 0.0 }
 0x16a   : > { %v590_v38 = vpop.f32.mrf.mxu0 }
 0x16b   : > { %v644_v40 = vmax.f32 %v587_v36, 0.0  ;;  %v667_v44 = vpack.c.bf16 %v643_v37, %v641_v41  ;;  %v591_v48 = vadd.f32 %v590_v38, %v1987_v51  ;;  %v1568_v37 = vld [vmem:[#allocation8 + $0x20] sm:$0xff]   ;;  %v1569_v38 = vld [vmem:[#allocation8 + $0x18] sm:$0xff]  }
 0x16c   : > { %v592_v42 = vpop.f32.mrf.mxu0  ;;  %1391 = vmatprep.subr.bf16.mxu0 %v1568_v37  ;;  %1420 = vmatprep.subr.bf16.mxu1 %v1568_v37 }
 0x16d   : > { %v668_v43 = vpack.c.bf16 %v644_v40, %v642_v39  ;;  %v593_v46 = vadd.f32 %v592_v42, %v1985_v50  ;;  %v645_v57 = vmax.f32 %v591_v48, 0.0  ;;  %1392 = vmatpush3.bf16.msra.mxu0 %v1568_v37  ;;  %1428 = vmatpush3.bf16.msra.mxu1 %v1568_v37  ;;  %v1572_v39 = vld [vmem:[#allocation8] sm:$0xff]  }
 0x16e   : > { %v594_v45 = vpop.f32.mrf.mxu0  ;;  %1393 = vmatprep.subr.bf16.mxu0 %v1569_v38  ;;  %1421 = vmatprep.subr.bf16.mxu1 %v1569_v38 }
 0x16f   : > { %v595_v47 = vadd.f32 %v594_v45, %v1987_v51  ;;  %868 = vmatprep.mubr.bf16.mxu1 %v668_v43  ;;  %v646_v55 = vmax.f32 %v593_v46, 0.0  ;;  %v2024_v43 = vld [vmem:[%s2117_s4] ss:$0 sm:$0xff] }
 0x170   : > { %v596_v49 = vpop.f32.mrf.mxu0  ;;  %869 = vmatmul.mubr.bf16.gmra.mxu1 %v667_v44 }
 0x171   : > { %v597_v52 = vadd.f32 %v596_v49, %v1985_v50  ;;  %v647_v53 = vmax.f32 %v595_v47, 0.0  ;;  %1394 = vmatpush3.bf16.msra.mxu0 %v1569_v38  ;;  %1429 = vmatpush3.bf16.msra.mxu1 %v1569_v38 }
 0x172   : > { %v600_v54 = vpop.f32.mrf.mxu0 }
 0x173   : > { %v648_v56 = vmax.f32 %v597_v52, 0.0  ;;  %v669_v60 = vpack.c.bf16 %v647_v53, %v645_v57  ;;  %v601_v0 = vadd.f32 %v600_v54, %v1987_v51 }
 0x174   : > { %v602_v58 = vpop.f32.mrf.mxu0 }
 0x175   : > { %v670_v59 = vpack.c.bf16 %v648_v56, %v646_v55  ;;  %v603_v62 = vadd.f32 %v602_v58, %v1985_v50  ;;  %v649_v7 = vmax.f32 %v601_v0, 0.0 }
 0x176   : > { %v604_v61 = vpop.f32.mrf.mxu0 }
 0x177   : > { %v605_v63 = vadd.f32 %v604_v61, %v1987_v51  ;;  %876 = vmatprep.mubr.bf16.mxu1 %v670_v59  ;;  %v650_v5 = vmax.f32 %v603_v62, 0.0 }
 0x178   : > { %v606_v1 = vpop.f32.mrf.mxu0  ;;  %877 = vmatmul.mubr.bf16.gmra.mxu1 %v669_v60 }
 0x179   : > { %v607_v2 = vadd.f32 %v606_v1, %v1985_v50  ;;  %v651_v3 = vmax.f32 %v605_v63, 0.0 }
 0x17a   : > { %v610_v4 = vpop.f32.mrf.mxu0 }
 0x17b   : > { %v652_v6 = vmax.f32 %v607_v2, 0.0  ;;  %v671_v10 = vpack.c.bf16 %v651_v3, %v649_v7  ;;  %v611_v14 = vadd.f32 %v610_v4, %v1987_v51 }
 0x17c   : > { %v612_v8 = vpop.f32.mrf.mxu0 }
 0x17d   : > { %v672_v9 = vpack.c.bf16 %v652_v6, %v650_v5  ;;  %v613_v12 = vadd.f32 %v612_v8, %v1985_v50  ;;  %v653_v21 = vmax.f32 %v611_v14, 0.0 }
 0x17e   : > { %v614_v11 = vpop.f32.mrf.mxu0 }
 0x17f   : > { %v615_v13 = vadd.f32 %v614_v11, %v1987_v51  ;;  %884 = vmatprep.mubr.bf16.mxu1 %v672_v9  ;;  %v654_v19 = vmax.f32 %v613_v12, 0.0 }
 0x180   : > { %v616_v15 = vpop.f32.mrf.mxu0  ;;  %885 = vmatmul.mubr.bf16.gmra.mxu1 %v671_v10 }
 0x181   : > { %v617_v16 = vadd.f32 %v616_v15, %v1985_v50  ;;  %v655_v17 = vmax.f32 %v615_v13, 0.0 }
 0x182   : > { %v620_v18 = vpop.f32.mrf.mxu0 }
 0x183   : > { %v656_v20 = vmax.f32 %v617_v16, 0.0  ;;  %v673_v24 = vpack.c.bf16 %v655_v17, %v653_v21  ;;  %v621_v28 = vadd.f32 %v620_v18, %v1987_v51 }
 0x184   : > { %v622_v22 = vpop.f32.mrf.mxu0 }
 0x185   : > { %v674_v23 = vpack.c.bf16 %v656_v20, %v654_v19  ;;  %v623_v26 = vadd.f32 %v622_v22, %v1985_v50  ;;  %v657_v34 = vmax.f32 %v621_v28, 0.0 }
 0x186   : > { %v624_v25 = vpop.f32.mrf.mxu0 }
 0x187   : > { %v625_v27 = vadd.f32 %v624_v25, %v1987_v51  ;;  %892 = vmatprep.mubr.bf16.mxu1 %v674_v23  ;;  %v658_v32 = vmax.f32 %v623_v26, 0.0  ;;  %v1570_v51 = vld [vmem:[#allocation8 + $0x10] sm:$0xff]  }
 0x188   : > { %v626_v29 = vpop.f32.mrf.mxu0  ;;  %893 = vmatmul.mubr.bf16.gmra.mxu1 %v673_v24  ;;  %1395 = vmatprep.subr.bf16.mxu0 %v1570_v51 }
 0x189   : > { %v627_v30 = vadd.f32 %v626_v29, %v1985_v50  ;;  %v659_v31 = vmax.f32 %v625_v27, 0.0  ;;  %1422 = vmatprep.subr.bf16.mxu1 %v1570_v51  ;;  %1396 = vmatpush3.bf16.msra.mxu0 %v1570_v51  ;;  %v1571_v50 = vld [vmem:[#allocation8 + $0x8] sm:$0xff]  }
 0x18a   : > { %1430 = vmatpush3.bf16.msra.mxu1 %v1570_v51  ;;  %1397 = vmatprep.subr.bf16.mxu0 %v1571_v50 }
 0x18b   : > { %v660_v33 = vmax.f32 %v627_v30, 0.0  ;;  %v675_v36 = vpack.c.bf16 %v659_v31, %v657_v34  ;;  %1423 = vmatprep.subr.bf16.mxu1 %v1571_v50 }
 0x18d   : > { %v676_v35 = vpack.c.bf16 %v660_v33, %v658_v32  ;;  %1398 = vmatpush3.bf16.msra.mxu0 %v1571_v50 }
 0x18e   : > { %1431 = vmatpush3.bf16.msra.mxu1 %v1571_v50  ;;  %1399 = vmatprep.subr.bf16.mxu0 %v1572_v39 }
 0x18f   : > { %900 = vmatprep.mubr.bf16.mxu1 %v676_v35  ;;  %1424 = vmatprep.subr.bf16.mxu1 %v1572_v39 }
 0x190   : > { %901 = vmatmul.mubr.bf16.gmra.mxu1 %v675_v36 }
 0x191   : > { %1400 = vmatpush3.bf16.msra.mxu0 %v1572_v39 }
 0x192   : > { %1432 = vmatpush3.bf16.msra.mxu1 %v1572_v39 }
 0x218   : > { %v1321_v40 = vpop.f32.mrf.mxu1 }
 0x21a   : > { %v1322_v41 = vpop.f32.mrf.mxu1 }
 0x21b   : > { %v1323_v42 = vadd.f32 %v1322_v41, %v1321_v40 }
 0x21c   : > { %v1324_v44 = vpop.f32.mrf.mxu1 }
 0x21d   : > { %v847_v46 = vadd.f32 %v1323_v42, %v2024_v43 }
 0x21e   : > { %v1325_v45 = vpop.f32.mrf.mxu1 }
 0x21f   : > { %v1326_v47 = vadd.f32 %v1325_v45, %v1324_v44  ;;  %v909_v53 = vmax.f32 %v847_v46, 0.0 }
 0x220   : > { %v1327_v48 = vpop.f32.mrf.mxu1 }
 0x221   : > { %v850_v49 = vadd.f32 %v1326_v47, %v2024_v43 }
 0x222   : > { %v1328_v52 = vpop.f32.mrf.mxu1 }
 0x223   : > { %v910_v54 = vmax.f32 %v850_v49, 0.0  ;;  %v1329_v55 = vadd.f32 %v1328_v52, %v1327_v48 }
 0x224   : > { %v1330_v56 = vpop.f32.mrf.mxu1 }
 0x225   : > { %v925_v57 = vpack.c.bf16 %v910_v54, %v909_v53  ;;  %v855_v59 = vadd.f32 %v1329_v55, %v2024_v43 }
 0x226   : > { %v1331_v58 = vpop.f32.mrf.mxu1 }
 0x227   : > { %v1332_v60 = vadd.f32 %v1331_v58, %v1330_v56  ;;  %1401 = vmatprep.mubr.bf16.mxu0 %v925_v57  ;;  %v911_v0 = vmax.f32 %v855_v59, 0.0 }
 0x228   : > { %v1333_v61 = vpop.f32.mrf.mxu1 }
 0x229   : > { %v858_v62 = vadd.f32 %v1332_v60, %v2024_v43 }
 0x22a   : > { %v1334_v63 = vpop.f32.mrf.mxu1 }
 0x22b   : > { %v912_v1 = vmax.f32 %v858_v62, 0.0  ;;  %v1335_v2 = vadd.f32 %v1334_v63, %v1333_v61 }
 0x22c   : > { %v1336_v3 = vpop.f32.mrf.mxu1 }
 0x22d   : > { %v926_v4 = vpack.c.bf16 %v912_v1, %v911_v0  ;;  %v863_v6 = vadd.f32 %v1335_v2, %v2024_v43 }
 0x22e   : > { %v1337_v5 = vpop.f32.mrf.mxu1 }
 0x22f   : > { %v1338_v7 = vadd.f32 %v1337_v5, %v1336_v3  ;;  %1402 = vmatmul.mubr.bf16.vlgmr.msra.gmra.mxu0 %v926_v4  ;;  %v913_v11 = vmax.f32 %v863_v6, 0.0  ;;  %v1289_v4 = vld [vmem:[%s2119_s6] ss:$0 sm:$0xff] }
 0x230   : > { %v1339_v8 = vpop.f32.mrf.mxu1 }
 0x231   : > { %v866_v9 = vadd.f32 %v1338_v7, %v2024_v43 }
 0x232   : > { %v1340_v10 = vpop.f32.mrf.mxu1 }
 0x233   : > { %v914_v12 = vmax.f32 %v866_v9, 0.0  ;;  %v1341_v13 = vadd.f32 %v1340_v10, %v1339_v8 }
 0x234   : > { %v1342_v14 = vpop.f32.mrf.mxu1 }
 0x235   : > { %v927_v15 = vpack.c.bf16 %v914_v12, %v913_v11  ;;  %v871_v17 = vadd.f32 %v1341_v13, %v2024_v43 }
 0x236   : > { %v1343_v16 = vpop.f32.mrf.mxu1 }
 0x237   : > { %v1344_v18 = vadd.f32 %v1343_v16, %v1342_v14  ;;  %1405 = vmatprep.mubr.bf16.mxu0 %v927_v15  ;;  %v915_v22 = vmax.f32 %v871_v17, 0.0 }
 0x238   : > { %v1345_v19 = vpop.f32.mrf.mxu1 }
 0x239   : > { %v874_v20 = vadd.f32 %v1344_v18, %v2024_v43 }
 0x23a   : > { %v1346_v21 = vpop.f32.mrf.mxu1 }
 0x23b   : > { %v916_v23 = vmax.f32 %v874_v20, 0.0  ;;  %v1347_v24 = vadd.f32 %v1346_v21, %v1345_v19 }
 0x23c   : > { %v1348_v25 = vpop.f32.mrf.mxu1 }
 0x23d   : > { %v928_v26 = vpack.c.bf16 %v916_v23, %v915_v22  ;;  %v879_v28 = vadd.f32 %v1347_v24, %v2024_v43 }
 0x23e   : > { %v1349_v27 = vpop.f32.mrf.mxu1 }
 0x23f   : > { %v1350_v29 = vadd.f32 %v1349_v27, %v1348_v25  ;;  %1406 = vmatmul.mubr.bf16.gmra.mxu0 %v928_v26  ;;  %v917_v33 = vmax.f32 %v879_v28, 0.0 }
 0x240   : > { %v1351_v30 = vpop.f32.mrf.mxu1 }
 0x241   : > { %v882_v31 = vadd.f32 %v1350_v29, %v2024_v43 }
 0x242   : > { %v1352_v32 = vpop.f32.mrf.mxu1 }
 0x243   : > { %v918_v34 = vmax.f32 %v882_v31, 0.0  ;;  %v1353_v35 = vadd.f32 %v1352_v32, %v1351_v30 }
 0x244   : > { %v1354_v36 = vpop.f32.mrf.mxu1 }
 0x245   : > { %v929_v37 = vpack.c.bf16 %v918_v34, %v917_v33  ;;  %v887_v51 = vadd.f32 %v1353_v35, %v2024_v43 }
 0x246   : > { %v1355_v38 = vpop.f32.mrf.mxu1 }
 0x247   : > { %v1356_v50 = vadd.f32 %v1355_v38, %v1354_v36  ;;  %1409 = vmatprep.mubr.bf16.mxu1 %v929_v37  ;;  %v919_v42 = vmax.f32 %v887_v51, 0.0 }
 0x248   : > { %v1357_v39 = vpop.f32.mrf.mxu1 }
 0x249   : > { %v890_v40 = vadd.f32 %v1356_v50, %v2024_v43 }
 0x24a   : > { %v1358_v41 = vpop.f32.mrf.mxu1 }
 0x24b   : > { %v920_v44 = vmax.f32 %v890_v40, 0.0  ;;  %v1359_v45 = vadd.f32 %v1358_v41, %v1357_v39 }
 0x24c   : > { %v1360_v46 = vpop.f32.mrf.mxu1 }
 0x24d   : > { %v930_v47 = vpack.c.bf16 %v920_v44, %v919_v42  ;;  %v895_v49 = vadd.f32 %v1359_v45, %v2024_v43 }
 0x24e   : > { %v1361_v48 = vpop.f32.mrf.mxu1 }
 0x24f   : > { %v1362_v52 = vadd.f32 %v1361_v48, %v1360_v46  ;;  %1410 = vmatmul.mubr.bf16.vlgmr.msra.gmra.mxu1 %v930_v47  ;;  %v921_v56 = vmax.f32 %v895_v49, 0.0 }
 0x250   : > { %v1363_v53 = vpop.f32.mrf.mxu1 }
 0x251   : > { %v898_v54 = vadd.f32 %v1362_v52, %v2024_v43 }
 0x252   : > { %v1364_v55 = vpop.f32.mrf.mxu1 }
 0x253   : > { %v922_v57 = vmax.f32 %v898_v54, 0.0  ;;  %v1365_v58 = vadd.f32 %v1364_v55, %v1363_v53 }
 0x254   : > { %v1366_v59 = vpop.f32.mrf.mxu1 }
 0x255   : > { %v931_v60 = vpack.c.bf16 %v922_v57, %v921_v56  ;;  %v903_v62 = vadd.f32 %v1365_v58, %v2024_v43 }
 0x256   : > { %v1367_v61 = vpop.f32.mrf.mxu1 }
 0x257   : > { %v1368_v63 = vadd.f32 %v1367_v61, %v1366_v59  ;;  %1413 = vmatprep.mubr.bf16.mxu1 %v931_v60  ;;  %v923_v1 = vmax.f32 %v903_v62, 0.0 }
 0x259   : > { %v906_v0 = vadd.f32 %v1368_v63, %v2024_v43 }
 0x25b   : > { %v924_v2 = vmax.f32 %v906_v0, 0.0 }
 0x25d   : > { %v932_v3 = vpack.c.bf16 %v924_v2, %v923_v1 }
 0x25f   : > { %1414 = vmatmul.mubr.bf16.gmra.mxu1 %v932_v3 }
 0x2ef   : > { %v1403_v5 = vpop.f32.mrf.mxu0 }
 0x2f0   : > { %v1047_v6 = vadd.f32 %v1403_v5, %v1289_v4 }
 0x2f1   : > { %v1038_v7 = vpop.f32.mrf.mxu0 }
 0x2f2   : > { %1103 = vst [vmem:[%s2046_s20 + $0x10] sm:$0xff] %v1047_v6  ;;  %v1039_v43 = vadd.f32 %v1289_v4, %v1038_v7 }
 0x2f3   : > { %v1404_v8 = vpop.f32.mrf.mxu0 }
 0x2f4   : > { %1101 = vst [vmem:[%s2046_s20] sm:$0xff] %v1039_v43  ;;  %v1050_v9 = vadd.f32 %v1404_v8, %v1289_v4 }
 0x2f5   : > { %v1041_v10 = vpop.f32.mrf.mxu0 }
 0x2f6   : > { %1104 = vst [vmem:[%s2046_s20 + $0x18] sm:$0xff] %v1050_v9  ;;  %v1042_v11 = vadd.f32 %v1289_v4, %v1041_v10 }
 0x2f8   : > { %1102 = vst [vmem:[%s2046_s20 + $0x8] sm:$0xff] %v1042_v11 }
 0x2ff   : > { %v1407_v12 = vpop.f32.mrf.mxu0 }
 0x300   : > { %v1063_v13 = vadd.f32 %v1407_v12, %v1289_v4 }
 0x301   : > { %v1054_v14 = vpop.f32.mrf.mxu0 }
 0x302   : > { %1107 = vst [vmem:[%s2046_s20 + $0x30] sm:$0xff] %v1063_v13  ;;  %v1055_v15 = vadd.f32 %v1289_v4, %v1054_v14 }
 0x303   : > { %v1408_v16 = vpop.f32.mrf.mxu0 }
 0x304   : > { %1105 = vst [vmem:[%s2046_s20 + $0x20] sm:$0xff] %v1055_v15  ;;  %v1066_v17 = vadd.f32 %v1408_v16, %v1289_v4 }
 0x305   : > { %v1057_v18 = vpop.f32.mrf.mxu0 }
 0x306   : > { %1108 = vst [vmem:[%s2046_s20 + $0x38] sm:$0xff] %v1066_v17  ;;  %v1058_v19 = vadd.f32 %v1289_v4, %v1057_v18 }
 0x308   : > { %1106 = vst [vmem:[%s2046_s20 + $0x28] sm:$0xff] %v1058_v19 }
 0x30f   : > { %v1411_v20 = vpop.f32.mrf.mxu1 }
 0x310   : > { %v1079_v21 = vadd.f32 %v1411_v20, %v1289_v4 }
 0x311   : > { %v1070_v22 = vpop.f32.mrf.mxu1 }
 0x312   : > { %1111 = vst [vmem:[%s2046_s20 + $0x50] sm:$0xff] %v1079_v21  ;;  %v1071_v23 = vadd.f32 %v1289_v4, %v1070_v22 }
 0x313   : > { %v1412_v24 = vpop.f32.mrf.mxu1 }
 0x314   : > { %1109 = vst [vmem:[%s2046_s20 + $0x40] sm:$0xff] %v1071_v23  ;;  %v1082_v25 = vadd.f32 %v1412_v24, %v1289_v4 }
 0x315   : > { %v1073_v26 = vpop.f32.mrf.mxu1 }
 0x316   : > { %1112 = vst [vmem:[%s2046_s20 + $0x58] sm:$0xff] %v1082_v25  ;;  %v1074_v27 = vadd.f32 %v1289_v4, %v1073_v26 }
 0x318   : > { %1110 = vst [vmem:[%s2046_s20 + $0x48] sm:$0xff] %v1074_v27 }
 0x31f   : > { %v1415_v28 = vpop.f32.mrf.mxu1 }
 0x320   : > { %v1095_v29 = vadd.f32 %v1415_v28, %v1289_v4 }
 0x321   : > { %v1086_v30 = vpop.f32.mrf.mxu1 }
 0x322   : > { %1115 = vst [vmem:[%s2046_s20 + $0x70] sm:$0xff] %v1095_v29  ;;  %v1087_v31 = vadd.f32 %v1289_v4, %v1086_v30 }
 0x323   : > { %v1416_v32 = vpop.f32.mrf.mxu1 }
 0x324   : > { %1113 = vst [vmem:[%s2046_s20 + $0x60] sm:$0xff] %v1087_v31  ;;  %v1098_v33 = vadd.f32 %v1416_v32, %v1289_v4 }
 0x325   : > { %v1089_v34 = vpop.f32.mrf.mxu1 }
 0x326   : > { %1116 = vst [vmem:[%s2046_s20 + $0x78] sm:$0xff] %v1098_v33  ;;  %v1090_v35 = vadd.f32 %v1289_v4, %v1089_v34 }
 0x328   : > { %1114 = vst [vmem:[%s2046_s20 + $0x68] sm:$0xff] %v1090_v35 }
 0x329   : > { %1692 = shalt.err (!%p1689_p9)
}
 0x32a   : > { %s1693_s16 = scalar_lea.hbm %s2067_s29, 2048  ;;  %s1697_s14 = scalar_lea.hbm %s2120_s7, 8192 }
 0x32b   : > { %p1694_p7 = scmp.ne.s32.totalorder %s2067_s29, %s1693_s16  ;;  %p1698_p6 = scmp.lt.s32.totalorder %s2067_s29, %s2120_s7 }
 0x32c   : > { %p1699_p10 = scmp.lt.s32.totalorder %s1697_s14, %s1693_s16 }
 0x32d   : > { %p1695_p4 = pnand %p1694_p7, %p2144_p13 }
 0x32e   : > { %p1700_p12 = por %p1699_p10, %p1698_p6 }
 0x32f   : > { %p1696_p8 = pneg %p1695_p4 }
 0x331   : > { %p1701_p11 = pnand %p1700_p12, %p1696_p8 }
 0x333   : > { %1704 = shalt.err (!%p1701_p11)
}
 0x334   : > { %s1763_s10 = smov 128   ;;  %s1764_s1 = smov 8  }
 0x335   : > { %1447 = dma.vmem_to_hbm [thread:$0]  (%p2144_p13), %s2069_s21, 2048, %s2067_s29, %s1118_s15, %s1763_s10, %s1763_s10, %s1764_s1  }
 0x336 PF: > { %p1474_p3 = scmp.ge.s32.totalorder %s1751_s27, 2  ;;  %s1146_s28 = sand.u32 1, %s1739_s24  }
 0x337   : > { %p2145_p0 = scmp.ne.s32.totalorder %s2129_s8, 0  ;;  %s1147_s30 = scalar_lea.sflag [#allocation4], %s1146_s28 }
 0x339   : > { %p1464_p1 = pnand %p1474_p3, %p2145_p0 }
 0x33b   : > { %p1465_p2 = pneg %p1464_p1 }
 0x33d   : > { %1734 = dma.done.wait (%p1465_p2), %s1147_s30, 2048  }
 0x33e   : > { %1736 = vsyncadd (%p1465_p2), %s1147_s30, 4294965248  ;;  %p22_p5 = scmp.ge.s32.totalorder %s1879_s13, 6   ;;  %s2146_s24 = smov %s1743_s25 }
 0x33f   : > { %s2147_s25 = smov %s1747_s26  ;;  %s2148_s26 = smov %s1900_s18 }
 0x340   : > { %s2149_s27 = smov %s1879_s13  ;;  %24 = sbr.rel (!%p22_p5) target bundleno = 9 (0x9), region = 105 }
 0x345   :  { %1152 = vsyncpa [#allocation3], 1 }
 0x346   :  { %1154 = vsyncpa [#allocation3 + $0x1], 1 }
 0x347   :  { %1155 = vsyncpa [#allocation6], 1 }
 0x348   :  { %1156 = vsyncpa [#allocation9], 1 }
 0x349   :  { %1157 = vsyncpa [#allocation4], 1 }
 0x34a   :  { %1159 = vsyncpa [#allocation4 + $0x1], 1 }

// kernel: tpu_custom_call.1
= control target key start
LH: loop header
LB: loop body
LE: loop exit
PB: predicated region body
PF: predicated region fallthrough
CT: control target
= control target key end

     0   :  { %s2113_s0 = inlined_call_operand.hbm [shape: bf16[512,128], index: 0, kind: input, shape index: {}]   ;;  %s2114_s1 = inlined_call_operand.hbm [shape: bf16[128,256], index: 1, kind: input, shape index: {}]   ;;  %s2115_s2 = inlined_call_operand.vmem [shape: f32[1,256], index: 2, kind: input, shape index: {}]   ;;  %s2116_s3 = inlined_call_operand.hbm [shape: bf16[256,128], index: 3, kind: input, shape index: {}]   ;;  %s2117_s4 = inlined_call_operand.vmem [shape: f32[1,128], index: 4, kind: input, shape index: {}]   ;;  %s2118_s5 = inlined_call_operand.hbm [shape: bf16[128,128], index: 5, kind: input, shape index: {}]   ;;  %s2119_s6 = inlined_call_operand.vmem [shape: f32[1,128], index: 6, kind: input, shape index: {}]   ;;  %s2120_s7 = inlined_call_operand.hbm [shape: f32[512,128], index: 7, kind: output, shape index: {}]  }
   0x1   :  { %2127 = sst [smem:[#allocation15_spill]] %s2114_s1 }
   0x2   :  { %12 = vsyncpa [#allocation3], 0 }
   0x3   :  { %14 = vsyncpa [#allocation3 + $0x1], 0 }
   0x4   :  { %15 = vsyncpa [#allocation6], 0 }
   0x5   :  { %16 = vsyncpa [#allocation9], 0 }
   0x6   :  { %17 = vsyncpa [#allocation4], 0 }
   0x7   :  { %19 = vsyncpa [#allocation4 + $0x1], 0  ;;  %s1805_s24 = smov 0   ;;  %s1807_s25 = smov 0  }
   0x8   :  { %s1809_s26 = smov 0   ;;  %s1811_s27 = smov 0  }
   0x9 LB: > { %s1826_s28 = sadd.s32 4294967295, %s1751_s27   ;;  %s1233_s29 = sadd.s32 4294967294, %s1751_s27   ;;  %s1751_s27 = sphi %s1811_s27, %s2149_s27   ;;  %s1747_s26 = sphi %s1809_s26, %s2148_s26   ;;  %s1743_s25 = sphi %s1807_s25, %s2147_s25   ;;  %s1739_s24 = sphi %s1805_s24, %s2146_s24  }
   0xa   : > { %p45_p0 = scmp.ne.s32.totalorder %s1743_s25, %s1739_s24  ;;  %p2121_p1 = scmp.eq.s32.totalorder %s1826_s28, 0 }
   0xb   : > { %p201_p3 = scmp.eq.s32.totalorder %s1233_s29, 3  ;;  %p1234_p5 = scmp.ge.s32.totalorder %s1751_s27, 1 }
   0xc   : > { %p1835_p4 = por %p2121_p1, %p45_p0  ;;  %p208_p7 = scmp.lt.s32.totalorder %s1751_s27, 5 }
   0xd   : > { %p1840_p6 = por %p201_p3, %p45_p0  ;;  %s1753_s10 = smov [#allocation5]  }
   0xe   : > { %s2128_s30 = scalar_select %p1835_p4, 1, 0 }
   0xf   : > { %s2129_s8 = scalar_select %p1840_p6, 1, 0 }
  0x10   : > { %p1845_p8 = pnand %p1234_p5, %p208_p7  ;;  %s220_s11 = sshll.u32 %s1753_s10, 4  ;;  %s221_s11 = int_to_ptr.vmem [resolvable:$true] %s220_s11 }
  0x11   : > { %s1754_s13 = smov [#allocation7]   ;;  %s1584_s15 = scalar_lea.vmem %s221_s11, 2048 }
  0x12   : > { %s2130_s9 = scalar_select %p1845_p8, 1, 0 }
  0x13   : > { %p1449_p9 = pneg %p1845_p8  ;;  %s236_s14 = sshll.u32 %s1754_s13, 4  ;;  %s237_s14 = int_to_ptr.vmem [resolvable:$true] %s236_s14 }
  0x14   : > { %p1585_p12 = scmp.ne.s32.totalorder %s221_s11, %s1584_s15  ;;  %p1592_p3 = scmp.lt.s32.totalorder %s221_s11, %s221_s11 }
  0x15   : > { %p1853_p10 = pnand %p1449_p9, %p2121_p1  ;;  %p1593_p5 = scmp.lt.s32.totalorder %s1584_s15, %s1584_s15 }
  0x17   : > { %p1575_p11 = pneg %p1853_p10  ;;  %p1594_p7 = por %p1593_p5, %p1592_p3 }
  0x19   : > { %p1587_p13 = pnand %p1585_p12, %p1575_p11 }
  0x1b   : > { %p1588_p0 = pneg %p1587_p13 }
  0x1d   : > { %p1595_p9 = pnand %p1594_p7, %p1588_p0 }
  0x1f   : > { %1598 = shalt.err (!%p1595_p9)
}
  0x20   : > { %s1755_s16 = smov 128   ;;  %s1756_s17 = smov 8  }
  0x21   : > { %s2132_s1 = sld [smem:[#allocation15_spill]]  ;;  %s1610_s20 = scalar_lea.vmem %s237_s14, 2048 }
  0x22   : > { %p1611_p1 = scmp.ne.s32.totalorder %s237_s14, %s1610_s20  ;;  %p1618_p2 = scmp.lt.s32.totalorder %s237_s14, %s237_s14 }
  0x23   : > { %p1619_p6 = scmp.lt.s32.totalorder %s1610_s20, %s1610_s20 }
  0x24   : > { %p1613_p12 = pnand %p1611_p1, %p1575_p11 }
  0x25   : > { %p1620_p3 = por %p1619_p6, %p1618_p2 }
  0x26   : > { %p1614_p13 = pneg %p1613_p12 }
  0x27   : > { %1452 = dma.hbm_to_vmem [thread:$0]  (!%p1853_p10), %s2132_s1, 2048, %s221_s11, [#allocation6], %s1755_s16, %s1755_s16, %s1756_s17  }
  0x28   : > { %p1621_p0 = pnand %p1620_p3, %p1614_p13 }
  0x2a   : > { %1624 = shalt.err (!%p1621_p0)
}
  0x2b   : > { %s2122_s21 = smov 64   ;;  %s2123_s22 = smov 4  }
  0x2c   : > { %1455 = dma.hbm_to_vmem [thread:$0]  (!%p1853_p10), %s2116_s3, 2048, %s237_s14, [#allocation6], %s2122_s21, %s2122_s21, %s2123_s22  }
  0x2d   : > { %s1759_s10 = smov [#allocation8]   ;;  %s1879_s13 = sadd.s32 1, %s1751_s27  }
  0x2e   : > { %s252_s11 = sshll.u32 %s1759_s10, 4  ;;  %s253_s11 = int_to_ptr.vmem [resolvable:$true] %s252_s11 }
  0x2f   : > { %s1636_s15 = scalar_lea.vmem %s253_s11, 1024  ;;  %p1644_p5 = scmp.lt.s32.totalorder %s253_s11, %s253_s11 }
  0x30   : > { %p1637_p1 = scmp.ne.s32.totalorder %s253_s11, %s1636_s15  ;;  %p1645_p7 = scmp.lt.s32.totalorder %s1636_s15, %s1636_s15 }
  0x32   : > { %p1639_p2 = pnand %p1637_p1, %p1575_p11  ;;  %p1646_p9 = por %p1645_p7, %p1644_p5 }
  0x34   : > { %p1640_p6 = pneg %p1639_p2 }
  0x36   : > { %p1647_p12 = pnand %p1646_p9, %p1640_p6 }
  0x38   : > { %1650 = shalt.err (!%p1647_p12)
}
  0x39   : > { %1458 = dma.hbm_to_vmem [thread:$0]  (!%p1853_p10), %s2118_s5, 1024, %s253_s11, [#allocation9], %s2122_s21, %s2122_s21, %s2123_s22  }
  0x3a   : > { %s29_s17 = ssub.s32 %s1751_s27, %s1879_s13  ;;  %s32_s12 = sadd.s32 1, %s1747_s26 }
  0x3b   : > { %p30_p11 = scmp.eq.s32.totalorder %s29_s17, 0  ;;  %p39_p13 = scmp.ne.s32.totalorder %s1747_s26, %s1743_s25 }
  0x3c   : > { %p40_p3 = scmp.eq.s32.totalorder %s1751_s27, 0  ;;  %p1470_p0 = scmp.lt.s32.totalorder %s1751_s27, 4 }
  0x3d   : > { %s1900_s18 = scalar_select %p30_p11, %s1747_s26, %s32_s12  }
  0x3e   : > { %p41_p1 = por %p40_p3, %p39_p13  ;;  %p2133_p2 = scmp.eq.s32.totalorder %s1826_s28, 3 }
  0x3f   : > { %s269_s20 = sand.u32 1, %s1747_s26   ;;  %s1303_s23 = sshll.u32 %s1751_s27, 10 }
  0x40   : > { %p1904_p6 = por %p2133_p2, %p39_p13  ;;  %s1239_s29 = sshll.u32 %s269_s20, 6 }
  0x41   : > { %s1913_s11 = scalar_lea.hbm %s2113_s0, %s1303_s23  ;;  %s273_s14 = scalar_lea.vmem [#allocation2], %s1239_s29 }
  0x42   : > { %s2134_s19 = scalar_select %p1904_p6, 1, 0 }
  0x43   : > { %s280_s16 = sshll.u32 %s273_s14, 4  ;;  %p1915_p10 = pnand %p1470_p0, %p41_p1  ;;  %s1919_s16 = int_to_ptr.vmem [resolvable:$true] %s280_s16 }
  0x44   : > { %s1921_s12 = scalar_lea.sflag [#allocation3], %s269_s20  ;;  %s1651_s21 = scalar_lea.hbm %s1913_s11, 1024 }
  0x45   : > { %p1652_p5 = scmp.ne.s32.totalorder %s1913_s11, %s1651_s21  ;;  %p1653_p7 = pneg %p1915_p10 }
  0x46   : > { %s1656_s29 = scalar_lea.hbm %s2113_s0, 4096  ;;  %p1657_p11 = scmp.lt.s32.totalorder %s1913_s11, %s2113_s0 }
  0x47   : > { %p1654_p9 = pnand %p1653_p7, %p1652_p5  ;;  %p1658_p13 = scmp.lt.s32.totalorder %s1656_s29, %s1651_s21 }
  0x49   : > { %p1655_p12 = pneg %p1654_p9  ;;  %p1659_p3 = por %p1658_p13, %p1657_p11 }
  0x4b   : > { %p1660_p0 = pnand %p1659_p3, %p1655_p12 }
  0x4d   : > { %1663 = shalt.err (!%p1660_p0)
}
  0x4e   : > { %s1664_s20 = scalar_lea.vmem %s1919_s16, 1024  ;;  %s1760_s22 = smov [#allocation2]  }
  0x4f   : > { %p1665_p1 = scmp.ne.s32.totalorder %s1919_s16, %s1664_s20  ;;  %s1669_s1 = sshll.u32 %s1760_s22, 4  ;;  %s1670_s1 = int_to_ptr.vmem [resolvable:$false] %s1669_s1 }
  0x50   : > { %s1671_s23 = scalar_lea.vmem %s1670_s1, 2048  ;;  %p1672_p9 = scmp.lt.s32.totalorder %s1919_s16, %s1670_s1 }
  0x51   : > { %p1667_p2 = pnand %p1665_p1, %p1653_p7  ;;  %p1673_p6 = scmp.lt.s32.totalorder %s1671_s23, %s1664_s20 }
  0x53   : > { %p1668_p5 = pneg %p1667_p2  ;;  %p1674_p4 = por %p1673_p6, %p1672_p9 }
  0x55   : > { %p1675_p8 = pnand %p1674_p4, %p1668_p5 }
  0x57   : > { %1678 = shalt.err (!%p1675_p8)
}
  0x58   : > { %s2136_s21 = smov 4   ;;  %s2137_s10 = smov 64  }
  0x59   : > { %1462 = dma.hbm_to_vmem [thread:$0]  (!%p1915_p10), %s1913_s11, 1024, %s1919_s16, %s1921_s12, %s2137_s10, %s2137_s10, %s2136_s21  }
  0x5a   : > { %p2138_p7 = scmp.ne.s32.totalorder %s2130_s9, 0 }
  0x5b   : > { %s1948_s22 = sand.u32 (!%p2138_p7), 1, %s1743_s25   ;;  %p2139_p4 = scmp.ne.s32.totalorder (!%p2138_p7), %s2128_s30, 0 }
  0x5c   : > { %292 = sbr.rel (%p2138_p7) target bundleno = 822 (0x336), region = 48  ;;  %s1243_s1 = sshll.u32 (!%p2138_p7), %s1948_s22, 6 }
  0x5d   : > { %s295_s29 = scalar_lea.sflag (!%p2138_p7), [#allocation3], %s1948_s22  ;;  %s1952_s15 = scalar_lea.vmem (!%p2138_p7), [#allocation2], %s1243_s1 }
  0x61   : > { %1722 = dma.done.wait (%p2139_p4), %s295_s29, 1024  }
  0x62   : > { %1724 = vsyncadd (%p2139_p4), %s295_s29, 4294966272  ;;  %p2140_p8 = scmp.eq.s32.totalorder %s1826_s28, 0 }
  0x64   : > { %1726 = dma.done.wait (%p2140_p8), [#allocation6], 4096   ;;  %p2141_p6 = pmov %p2140_p8 }
  0x66   : > { %1728 = vsyncadd (%p2141_p6), [#allocation6], 4294963200  ;;  %p2142_p10 = pmov %p2141_p6 }
  0x67   : > { %p2143_p12 = pmov %p2141_p6 }
  0x68   : > { %1730 = dma.done.wait (%p2142_p10), [#allocation9], 1024  }
  0x69   : > { %1732 = vsyncadd (%p2143_p12), [#allocation9], 4294966272  ;;  %v1761_v0 = vmov 0   ;;  %v1517_v1 = vld [vmem:[#allocation5 + $0x74] ss:$8 sps:$4 sm:$0xff]   ;;  %v1553_v19 = vld [vmem:[#allocation7 + $0x68] sm:$0xff]   ;;  %v378_v44 = vlaneseq }
  0x6a   : > { %548 = vmatprep.mubr.bf16.mxu0 %v1761_v0  ;;  %v1519_v2 = vld [vmem:[#allocation5 + $0x70] ss:$8 sps:$4 sm:$0xff]   ;;  %516 = vmatprep.subr.bf16.mxu0 %v1517_v1  ;;  %v1520_v3 = vld [vmem:[#allocation5 + $0x64] ss:$8 sps:$4 sm:$0xff]   ;;  %v1522_v4 = vld [vmem:[#allocation5 + $0x60] ss:$8 sps:$4 sm:$0xff]  }
  0x6b   : > { %517 = vmatpush1.bf16.msra.mxu0 %v1519_v2  ;;  %v1523_v5 = vld [vmem:[#allocation5 + $0x54] ss:$8 sps:$4 sm:$0xff]   ;;  %v1525_v6 = vld [vmem:[#allocation5 + $0x50] ss:$8 sps:$4 sm:$0xff]   ;;  %v1526_v7 = vld [vmem:[#allocation5 + $0x44] ss:$8 sps:$4 sm:$0xff]  }
  0x6c   : > { %518 = vmatprep.subr.bf16.mxu0 %v1520_v3  ;;  %v1528_v8 = vld [vmem:[#allocation5 + $0x40] ss:$8 sps:$4 sm:$0xff]   ;;  %v1529_v9 = vld [vmem:[#allocation5 + $0x34] ss:$8 sps:$4 sm:$0xff]   ;;  %v1531_v10 = vld [vmem:[#allocation5 + $0x30] ss:$8 sps:$4 sm:$0xff]  }
  0x6d   : > { %v1532_v11 = vld [vmem:[#allocation5 + $0x24] ss:$8 sps:$4 sm:$0xff]   ;;  %v1534_v12 = vld [vmem:[#allocation5 + $0x20] ss:$8 sps:$4 sm:$0xff]   ;;  %v1535_v13 = vld [vmem:[#allocation5 + $0x14] ss:$8 sps:$4 sm:$0xff]  }
  0x6e   : > { %v1549_v14 = vld [vmem:[#allocation7 + $0x78] sm:$0xff]   ;;  %v1551_v17 = vld [vmem:[#allocation7 + $0x70] sm:$0xff]   ;;  %v1538_v20 = vld [vmem:[#allocation5 + $0x4] ss:$8 sps:$4 sm:$0xff]   ;;  %v379_v45 = vshrl.u32 %v378_v44, 7  ;;  %s1247_s17 = sshll.u32 %s1948_s22, 7 }
  0x6f   : > { %519 = vmatpush1.bf16.msra.mxu0 %v1522_v4  ;;  %v1550_v15 = vld [vmem:[#allocation7 + $0x38] sm:$0xff]   ;;  %1305 = vmatprep.subr.bf16.mxu1 %v1549_v14  ;;  %v1552_v18 = vld [vmem:[#allocation7 + $0x30] sm:$0xff]   ;;  %v1540_v21 = vld [vmem:[#allocation5] ss:$8 sps:$4 sm:$0xff]   ;;  %s2046_s20 = scalar_lea.vmem [#allocation10], %s1247_s17  ;;  %s1304_s23 = sshll.u32 %s1826_s28, 11 }
  0x70   : > { %520 = vmatprep.subr.bf16.mxu0 %v1523_v5  ;;  %v1537_v16 = vld [vmem:[#allocation5 + $0x10] ss:$8 sps:$4 sm:$0xff]   ;;  %1306 = vmatpush3.bf16.msra.mxu1 %v1550_v15  ;;  %v1554_v22 = vld [vmem:[#allocation7 + $0x28] sm:$0xff]   ;;  %v1555_v23 = vld [vmem:[#allocation7 + $0x60] sm:$0xff]   ;;  %v384_v46 = vsub.s32 1, %v379_v45  ;;  %v380_v47 = vsub.s32 0, %v379_v45  ;;  %s2067_s29 = scalar_lea.hbm %s2120_s7, %s1304_s23 }
  0x71   : > { %1307 = vmatprep.subr.bf16.mxu1 %v1551_v17  ;;  %v1541_v24 = vld [vmem:[%s1952_s15] sm:$0xff]   ;;  %v1557_v26 = vld [vmem:[#allocation7 + $0x58] sm:$0xff]   ;;  %v1542_v28 = vld [vmem:[%s1952_s15 + $0x8] sm:$0xff]   ;;  %s1131_s21 = sshll.u32 %s2046_s20, 4  ;;  %p2144_p13 = scmp.ne.s32.totalorder %s2134_s19, 0  ;;  %s2069_s21 = int_to_ptr.vmem [resolvable:$true] %s1131_s21 }
  0x72   : > { %v1556_v25 = vld [vmem:[#allocation7 + $0x20] sm:$0xff]   ;;  %v1558_v27 = vld [vmem:[#allocation7 + $0x18] sm:$0xff]   ;;  %v1543_v29 = vld [vmem:[%s1952_s15 + $0x10] sm:$0xff]   ;;  %s1679_s28 = scalar_lea.vmem %s2069_s21, 2048  ;;  %s1762_s30 = smov [#allocation10]  }
  0x73   : > { %521 = vmatpush1.bf16.msra.mxu0 %v1525_v6  ;;  %v1544_v30 = vld [vmem:[%s1952_s15 + $0x18] sm:$0xff]   ;;  %v1545_v31 = vld [vmem:[%s1952_s15 + $0x20] sm:$0xff]   ;;  %v1546_v32 = vld [vmem:[%s1952_s15 + $0x28] sm:$0xff]   ;;  %p1680_p11 = scmp.ne.s32.totalorder %s2069_s21, %s1679_s28  ;;  %s1683_s9 = sshll.u32 %s1762_s30, 4  ;;  %s1684_s9 = int_to_ptr.vmem [resolvable:$false] %s1683_s9 }
  0x74   : > { %522 = vmatprep.subr.bf16.mxu0 %v1526_v7  ;;  %1308 = vmatpush3.bf16.msra.mxu1 %v1552_v18  ;;  %v1547_v33 = vld [vmem:[%s1952_s15 + $0x30] sm:$0xff]   ;;  %v1548_v34 = vld [vmem:[%s1952_s15 + $0x38] sm:$0xff]   ;;  %v1561_v37 = vld [vmem:[#allocation7 + $0x48] sm:$0xff]   ;;  %s1118_s15 = scalar_lea.sflag [#allocation4], %s1948_s22  ;;  %s1685_s11 = scalar_lea.vmem %s1684_s9, 4096 }
  0x75   : > { %1309 = vmatprep.subr.bf16.mxu1 %v1553_v19  ;;  %v1559_v35 = vld [vmem:[#allocation7 + $0x50] sm:$0xff]   ;;  %v1562_v38 = vld [vmem:[#allocation7 + $0x8] sm:$0xff]   ;;  %v1563_v39 = vld [vmem:[#allocation7 + $0x40] sm:$0xff]   ;;  %p1681_p3 = pnand %p1680_p11, %p2144_p13  ;;  %p1686_p1 = scmp.lt.s32.totalorder %s2069_s21, %s1684_s9 }
  0x76   : > { %v1560_v36 = vld [vmem:[#allocation7 + $0x10] sm:$0xff]   ;;  %v1564_v40 = vld [vmem:[#allocation7] sm:$0xff]   ;;  %v1565_v41 = vld [vmem:[#allocation8 + $0x38] sm:$0xff]   ;;  %p1687_p2 = scmp.lt.s32.totalorder %s1685_s11, %s1679_s28 }
  0x77   : > { %523 = vmatpush1.bf16.msra.mxu0 %v1528_v8  ;;  %v1566_v42 = vld [vmem:[#allocation8 + $0x30] sm:$0xff]   ;;  %v1567_v43 = vld [vmem:[#allocation8 + $0x28] sm:$0xff]   ;;  %v376_v48 = vld [vmem:[%s2115_s2] sm:$0x3]  ;;  %p1682_p0 = pneg %p1681_p3 }
  0x78   : > { %524 = vmatprep.subr.bf16.mxu0 %v1529_v9  ;;  %1310 = vmatpush3.bf16.msra.mxu1 %v1554_v22  ;;  %v1985_v50 = vrot.slane %v376_v48, %v384_v46  ;;  %v1987_v51 = vrot.slane %v376_v48, %v380_v47  ;;  %p1688_p5 = por %p1687_p2, %p1686_p1 }
  0x79   : > { %1311 = vmatprep.subr.bf16.mxu1 %v1555_v23 }
  0x7a   : > { %p1689_p9 = pnand %p1688_p5, %p1682_p0 }
  0x7b   : > { %525 = vmatpush1.bf16.msra.mxu0 %v1531_v10 }
  0x7c   : > { %526 = vmatprep.subr.bf16.mxu0 %v1532_v11  ;;  %1312 = vmatpush3.bf16.msra.mxu1 %v1556_v25 }
  0x7d   : > { %1313 = vmatprep.subr.bf16.mxu1 %v1557_v26 }
  0x7f   : > { %527 = vmatpush1.bf16.msra.mxu0 %v1534_v12 }
  0x80   : > { %528 = vmatprep.subr.bf16.mxu0 %v1535_v13  ;;  %1314 = vmatpush3.bf16.msra.mxu1 %v1558_v27 }
  0x81   : > { %1315 = vmatprep.subr.bf16.mxu1 %v1559_v35 }
  0x83   : > { %529 = vmatpush1.bf16.msra.mxu0 %v1537_v16 }
  0x84   : > { %530 = vmatprep.subr.bf16.mxu0 %v1538_v20  ;;  %1316 = vmatpush3.bf16.msra.mxu1 %v1560_v36 }
  0x85   : > { %1317 = vmatprep.subr.bf16.mxu1 %v1561_v37 }
  0x87   : > { %531 = vmatpush1.bf16.msra.mxu0 %v1540_v21 }
  0x88   : > { %1318 = vmatpush3.bf16.msra.mxu1 %v1562_v38  ;;  %1385 = vmatprep.subr.bf16.mxu0 %v1565_v41 }
  0x89   : > { %1319 = vmatprep.subr.bf16.mxu1 %v1563_v39 }
  0x8a   : > { %549 = vmatmul.mubr.bf16.vlgmr.msra.gmra.mxu0 %v1541_v24 }
  0x8b   : > { %558 = vmatprep.mubr.bf16.mxu0 %v1761_v0  ;;  %1386 = vmatpush3.bf16.msra.mxu0 %v1565_v41 }
  0x8c   : > { %1320 = vmatpush3.bf16.msra.mxu1 %v1564_v40  ;;  %1387 = vmatprep.subr.bf16.mxu0 %v1566_v42 }
  0x8d   : > { %1417 = vmatprep.subr.bf16.mxu1 %v1565_v41 }
  0x8f   : > { %1388 = vmatpush3.bf16.msra.mxu0 %v1566_v42 }
  0x90   : > { %1389 = vmatprep.subr.bf16.mxu0 %v1567_v43 }
  0x92   : > { %559 = vmatmul.mubr.bf16.gmra.mxu0 %v1542_v28 }
  0x93   : > { %568 = vmatprep.mubr.bf16.mxu0 %v1761_v0  ;;  %1390 = vmatpush3.bf16.msra.mxu0 %v1567_v43 }
  0x9a   : > { %569 = vmatmul.mubr.bf16.gmra.mxu0 %v1543_v29 }
  0x9b   : > { %578 = vmatprep.mubr.bf16.mxu0 %v1761_v0 }
  0xa2   : > { %579 = vmatmul.mubr.bf16.gmra.mxu0 %v1544_v30 }
  0xa3   : > { %588 = vmatprep.mubr.bf16.mxu0 %v1761_v0 }
  0xaa   : > { %589 = vmatmul.mubr.bf16.gmra.mxu0 %v1545_v31 }
  0xab   : > { %598 = vmatprep.mubr.bf16.mxu0 %v1761_v0 }
  0xb2   : > { %599 = vmatmul.mubr.bf16.gmra.mxu0 %v1546_v32 }
  0xb3   : > { %608 = vmatprep.mubr.bf16.mxu0 %v1761_v0 }
  0xba   : > { %609 = vmatmul.mubr.bf16.gmra.mxu0 %v1547_v33 }
  0xbb   : > { %618 = vmatprep.mubr.bf16.mxu0 %v1761_v0 }
  0xc2   : > { %619 = vmatmul.mubr.bf16.gmra.mxu0 %v1548_v34 }
 0x14a   : > { %v550_v49 = vpop.f32.mrf.mxu0 }
 0x14b   : > { %v551_v56 = vadd.f32 %v550_v49, %v1987_v51 }
 0x14c   : > { %v552_v52 = vpop.f32.mrf.mxu0 }
 0x14d   : > { %v553_v54 = vadd.f32 %v552_v52, %v1985_v50  ;;  %v629_v63 = vmax.f32 %v551_v56, 0.0 }
 0x14e   : > { %v554_v53 = vpop.f32.mrf.mxu0 }
 0x14f   : > { %v555_v55 = vadd.f32 %v554_v53, %v1987_v51  ;;  %v630_v61 = vmax.f32 %v553_v54, 0.0 }
 0x150   : > { %v556_v57 = vpop.f32.mrf.mxu0 }
 0x151   : > { %v557_v58 = vadd.f32 %v556_v57, %v1985_v50  ;;  %v631_v59 = vmax.f32 %v555_v55, 0.0 }
 0x152   : > { %v560_v60 = vpop.f32.mrf.mxu0 }
 0x153   : > { %v632_v62 = vmax.f32 %v557_v58, 0.0  ;;  %v661_v2 = vpack.c.bf16 %v631_v59, %v629_v63  ;;  %v561_v6 = vadd.f32 %v560_v60, %v1987_v51 }
 0x154   : > { %v562_v0 = vpop.f32.mrf.mxu0 }
 0x155   : > { %v662_v1 = vpack.c.bf16 %v632_v62, %v630_v61  ;;  %v563_v4 = vadd.f32 %v562_v0, %v1985_v50  ;;  %v633_v13 = vmax.f32 %v561_v6, 0.0 }
 0x156   : > { %v564_v3 = vpop.f32.mrf.mxu0 }
 0x157   : > { %v565_v5 = vadd.f32 %v564_v3, %v1987_v51  ;;  %844 = vmatprep.mubr.bf16.mxu1 %v662_v1  ;;  %v634_v11 = vmax.f32 %v563_v4, 0.0 }
 0x158   : > { %v566_v7 = vpop.f32.mrf.mxu0  ;;  %845 = vmatmul.mubr.bf16.vlgmr.msra.gmra.mxu1 %v661_v2 }
 0x159   : > { %v567_v8 = vadd.f32 %v566_v7, %v1985_v50  ;;  %1425 = vmatpush3.bf16.msra.mxu1 %v1565_v41  ;;  %v635_v9 = vmax.f32 %v565_v5, 0.0 }
 0x15a   : > { %v570_v10 = vpop.f32.mrf.mxu0  ;;  %1418 = vmatprep.subr.bf16.mxu1 %v1566_v42 }
 0x15b   : > { %v636_v12 = vmax.f32 %v567_v8, 0.0  ;;  %v663_v16 = vpack.c.bf16 %v635_v9, %v633_v13  ;;  %v571_v20 = vadd.f32 %v570_v10, %v1987_v51 }
 0x15c   : > { %v572_v14 = vpop.f32.mrf.mxu0 }
 0x15d   : > { %v664_v15 = vpack.c.bf16 %v636_v12, %v634_v11  ;;  %1426 = vmatpush3.bf16.msra.mxu1 %v1566_v42  ;;  %v573_v18 = vadd.f32 %v572_v14, %v1985_v50  ;;  %v637_v27 = vmax.f32 %v571_v20, 0.0 }
 0x15e   : > { %v574_v17 = vpop.f32.mrf.mxu0  ;;  %1419 = vmatprep.subr.bf16.mxu1 %v1567_v43 }
 0x15f   : > { %v575_v19 = vadd.f32 %v574_v17, %v1987_v51  ;;  %852 = vmatprep.mubr.bf16.mxu1 %v664_v15  ;;  %v638_v25 = vmax.f32 %v573_v18, 0.0 }
 0x160   : > { %v576_v21 = vpop.f32.mrf.mxu0  ;;  %853 = vmatmul.mubr.bf16.gmra.mxu1 %v663_v16 }
 0x161   : > { %v577_v22 = vadd.f32 %v576_v21, %v1985_v50  ;;  %1427 = vmatpush3.bf16.msra.mxu1 %v1567_v43  ;;  %v639_v23 = vmax.f32 %v575_v19, 0.0 }
 0x162   : > { %v580_v24 = vpop.f32.mrf.mxu0 }
 0x163   : > { %v640_v26 = vmax.f32 %v577_v22, 0.0  ;;  %v665_v30 = vpack.c.bf16 %v639_v23, %v637_v27  ;;  %v581_v34 = vadd.f32 %v580_v24, %v1987_v51 }
 0x164   : > { %v582_v28 = vpop.f32.mrf.mxu0 }
 0x165   : > { %v666_v29 = vpack.c.bf16 %v640_v26, %v638_v25  ;;  %v583_v32 = vadd.f32 %v582_v28, %v1985_v50  ;;  %v641_v41 = vmax.f32 %v581_v34, 0.0 }
 0x166   : > { %v584_v31 = vpop.f32.mrf.mxu0 }
 0x167   : > { %v585_v33 = vadd.f32 %v584_v31, %v1987_v51  ;;  %860 = vmatprep.mubr.bf16.mxu1 %v666_v29  ;;  %v642_v39 = vmax.f32 %v583_v32, 0.0 }
 0x168   : > { %v586_v35 = vpop.f32.mrf.mxu0  ;;  %861 = vmatmul.mubr.bf16.gmra.mxu1 %v665_v30 }
 0x169   : > { %v587_v36 = vadd.f32 %v586_v35, %v1985_v50  ;;  %v643_v37 = vmax.f32 %v585_v33, 0.0 }
 0x16a   : > { %v590_v38 = vpop.f32.mrf.mxu0 }
 0x16b   : > { %v644_v40 = vmax.f32 %v587_v36, 0.0  ;;  %v667_v44 = vpack.c.bf16 %v643_v37, %v641_v41  ;;  %v591_v48 = vadd.f32 %v590_v38, %v1987_v51  ;;  %v1568_v37 = vld [vmem:[#allocation8 + $0x20] sm:$0xff]   ;;  %v1569_v38 = vld [vmem:[#allocation8 + $0x18] sm:$0xff]  }
 0x16c   : > { %v592_v42 = vpop.f32.mrf.mxu0  ;;  %1391 = vmatprep.subr.bf16.mxu0 %v1568_v37  ;;  %1420 = vmatprep.subr.bf16.mxu1 %v1568_v37 }
 0x16d   : > { %v668_v43 = vpack.c.bf16 %v644_v40, %v642_v39  ;;  %v593_v46 = vadd.f32 %v592_v42, %v1985_v50  ;;  %v645_v57 = vmax.f32 %v591_v48, 0.0  ;;  %1392 = vmatpush3.bf16.msra.mxu0 %v1568_v37  ;;  %1428 = vmatpush3.bf16.msra.mxu1 %v1568_v37  ;;  %v1572_v39 = vld [vmem:[#allocation8] sm:$0xff]  }
 0x16e   : > { %v594_v45 = vpop.f32.mrf.mxu0  ;;  %1393 = vmatprep.subr.bf16.mxu0 %v1569_v38  ;;  %1421 = vmatprep.subr.bf16.mxu1 %v1569_v38 }
 0x16f   : > { %v595_v47 = vadd.f32 %v594_v45, %v1987_v51  ;;  %868 = vmatprep.mubr.bf16.mxu1 %v668_v43  ;;  %v646_v55 = vmax.f32 %v593_v46, 0.0  ;;  %v2024_v43 = vld [vmem:[%s2117_s4] ss:$0 sm:$0xff] }
 0x170   : > { %v596_v49 = vpop.f32.mrf.mxu0  ;;  %869 = vmatmul.mubr.bf16.gmra.mxu1 %v667_v44 }
 0x171   : > { %v597_v52 = vadd.f32 %v596_v49, %v1985_v50  ;;  %v647_v53 = vmax.f32 %v595_v47, 0.0  ;;  %1394 = vmatpush3.bf16.msra.mxu0 %v1569_v38  ;;  %1429 = vmatpush3.bf16.msra.mxu1 %v1569_v38 }
 0x172   : > { %v600_v54 = vpop.f32.mrf.mxu0 }
 0x173   : > { %v648_v56 = vmax.f32 %v597_v52, 0.0  ;;  %v669_v60 = vpack.c.bf16 %v647_v53, %v645_v57  ;;  %v601_v0 = vadd.f32 %v600_v54, %v1987_v51 }
 0x174   : > { %v602_v58 = vpop.f32.mrf.mxu0 }
 0x175   : > { %v670_v59 = vpack.c.bf16 %v648_v56, %v646_v55  ;;  %v603_v62 = vadd.f32 %v602_v58, %v1985_v50  ;;  %v649_v7 = vmax.f32 %v601_v0, 0.0 }
 0x176   : > { %v604_v61 = vpop.f32.mrf.mxu0 }
 0x177   : > { %v605_v63 = vadd.f32 %v604_v61, %v1987_v51  ;;  %876 = vmatprep.mubr.bf16.mxu1 %v670_v59  ;;  %v650_v5 = vmax.f32 %v603_v62, 0.0 }
 0x178   : > { %v606_v1 = vpop.f32.mrf.mxu0  ;;  %877 = vmatmul.mubr.bf16.gmra.mxu1 %v669_v60 }
 0x179   : > { %v607_v2 = vadd.f32 %v606_v1, %v1985_v50  ;;  %v651_v3 = vmax.f32 %v605_v63, 0.0 }
 0x17a   : > { %v610_v4 = vpop.f32.mrf.mxu0 }
 0x17b   : > { %v652_v6 = vmax.f32 %v607_v2, 0.0  ;;  %v671_v10 = vpack.c.bf16 %v651_v3, %v649_v7  ;;  %v611_v14 = vadd.f32 %v610_v4, %v1987_v51 }
 0x17c   : > { %v612_v8 = vpop.f32.mrf.mxu0 }
 0x17d   : > { %v672_v9 = vpack.c.bf16 %v652_v6, %v650_v5  ;;  %v613_v12 = vadd.f32 %v612_v8, %v1985_v50  ;;  %v653_v21 = vmax.f32 %v611_v14, 0.0 }
 0x17e   : > { %v614_v11 = vpop.f32.mrf.mxu0 }
 0x17f   : > { %v615_v13 = vadd.f32 %v614_v11, %v1987_v51  ;;  %884 = vmatprep.mubr.bf16.mxu1 %v672_v9  ;;  %v654_v19 = vmax.f32 %v613_v12, 0.0 }
 0x180   : > { %v616_v15 = vpop.f32.mrf.mxu0  ;;  %885 = vmatmul.mubr.bf16.gmra.mxu1 %v671_v10 }
 0x181   : > { %v617_v16 = vadd.f32 %v616_v15, %v1985_v50  ;;  %v655_v17 = vmax.f32 %v615_v13, 0.0 }
 0x182   : > { %v620_v18 = vpop.f32.mrf.mxu0 }
 0x183   : > { %v656_v20 = vmax.f32 %v617_v16, 0.0  ;;  %v673_v24 = vpack.c.bf16 %v655_v17, %v653_v21  ;;  %v621_v28 = vadd.f32 %v620_v18, %v1987_v51 }
 0x184   : > { %v622_v22 = vpop.f32.mrf.mxu0 }
 0x185   : > { %v674_v23 = vpack.c.bf16 %v656_v20, %v654_v19  ;;  %v623_v26 = vadd.f32 %v622_v22, %v1985_v50  ;;  %v657_v34 = vmax.f32 %v621_v28, 0.0 }
 0x186   : > { %v624_v25 = vpop.f32.mrf.mxu0 }
 0x187   : > { %v625_v27 = vadd.f32 %v624_v25, %v1987_v51  ;;  %892 = vmatprep.mubr.bf16.mxu1 %v674_v23  ;;  %v658_v32 = vmax.f32 %v623_v26, 0.0  ;;  %v1570_v51 = vld [vmem:[#allocation8 + $0x10] sm:$0xff]  }
 0x188   : > { %v626_v29 = vpop.f32.mrf.mxu0  ;;  %893 = vmatmul.mubr.bf16.gmra.mxu1 %v673_v24  ;;  %1395 = vmatprep.subr.bf16.mxu0 %v1570_v51 }
 0x189   : > { %v627_v30 = vadd.f32 %v626_v29, %v1985_v50  ;;  %v659_v31 = vmax.f32 %v625_v27, 0.0  ;;  %1422 = vmatprep.subr.bf16.mxu1 %v1570_v51  ;;  %1396 = vmatpush3.bf16.msra.mxu0 %v1570_v51  ;;  %v1571_v50 = vld [vmem:[#allocation8 + $0x8] sm:$0xff]  }
 0x18a   : > { %1430 = vmatpush3.bf16.msra.mxu1 %v1570_v51  ;;  %1397 = vmatprep.subr.bf16.mxu0 %v1571_v50 }
 0x18b   : > { %v660_v33 = vmax.f32 %v627_v30, 0.0  ;;  %v675_v36 = vpack.c.bf16 %v659_v31, %v657_v34  ;;  %1423 = vmatprep.subr.bf16.mxu1 %v1571_v50 }
 0x18d   : > { %v676_v35 = vpack.c.bf16 %v660_v33, %v658_v32  ;;  %1398 = vmatpush3.bf16.msra.mxu0 %v1571_v50 }
 0x18e   : > { %1431 = vmatpush3.bf16.msra.mxu1 %v1571_v50  ;;  %1399 = vmatprep.subr.bf16.mxu0 %v1572_v39 }
 0x18f   : > { %900 = vmatprep.mubr.bf16.mxu1 %v676_v35  ;;  %1424 = vmatprep.subr.bf16.mxu1 %v1572_v39 }
 0x190   : > { %901 = vmatmul.mubr.bf16.gmra.mxu1 %v675_v36 }
 0x191   : > { %1400 = vmatpush3.bf16.msra.mxu0 %v1572_v39 }
 0x192   : > { %1432 = vmatpush3.bf16.msra.mxu1 %v1572_v39 }
 0x218   : > { %v1321_v40 = vpop.f32.mrf.mxu1 }
 0x21a   : > { %v1322_v41 = vpop.f32.mrf.mxu1 }
 0x21b   : > { %v1323_v42 = vadd.f32 %v1322_v41, %v1321_v40 }
 0x21c   : > { %v1324_v44 = vpop.f32.mrf.mxu1 }
 0x21d   : > { %v847_v46 = vadd.f32 %v1323_v42, %v2024_v43 }
 0x21e   : > { %v1325_v45 = vpop.f32.mrf.mxu1 }
 0x21f   : > { %v1326_v47 = vadd.f32 %v1325_v45, %v1324_v44  ;;  %v909_v53 = vmax.f32 %v847_v46, 0.0 }
 0x220   : > { %v1327_v48 = vpop.f32.mrf.mxu1 }
 0x221   : > { %v850_v49 = vadd.f32 %v1326_v47, %v2024_v43 }
 0x222   : > { %v1328_v52 = vpop.f32.mrf.mxu1 }
 0x223   : > { %v910_v54 = vmax.f32 %v850_v49, 0.0  ;;  %v1329_v55 = vadd.f32 %v1328_v52, %v1327_v48 }
 0x224   : > { %v1330_v56 = vpop.f32.mrf.mxu1 }
 0x225   : > { %v925_v57 = vpack.c.bf16 %v910_v54, %v909_v53  ;;  %v855_v59 = vadd.f32 %v1329_v55, %v2024_v43 }
 0x226   : > { %v1331_v58 = vpop.f32.mrf.mxu1 }
 0x227   : > { %v1332_v60 = vadd.f32 %v1331_v58, %v1330_v56  ;;  %1401 = vmatprep.mubr.bf16.mxu0 %v925_v57  ;;  %v911_v0 = vmax.f32 %v855_v59, 0.0 }
 0x228   : > { %v1333_v61 = vpop.f32.mrf.mxu1 }
 0x229   : > { %v858_v62 = vadd.f32 %v1332_v60, %v2024_v43 }
 0x22a   : > { %v1334_v63 = vpop.f32.mrf.mxu1 }
 0x22b   : > { %v912_v1 = vmax.f32 %v858_v62, 0.0  ;;  %v1335_v2 = vadd.f32 %v1334_v63, %v1333_v61 }
 0x22c   : > { %v1336_v3 = vpop.f32.mrf.mxu1 }
 0x22d   : > { %v926_v4 = vpack.c.bf16 %v912_v1, %v911_v0  ;;  %v863_v6 = vadd.f32 %v1335_v2, %v2024_v43 }
 0x22e   : > { %v1337_v5 = vpop.f32.mrf.mxu1 }
 0x22f   : > { %v1338_v7 = vadd.f32 %v1337_v5, %v1336_v3  ;;  %1402 = vmatmul.mubr.bf16.vlgmr.msra.gmra.mxu0 %v926_v4  ;;  %v913_v11 = vmax.f32 %v863_v6, 0.0  ;;  %v1289_v4 = vld [vmem:[%s2119_s6] ss:$0 sm:$0xff] }
 0x230   : > { %v1339_v8 = vpop.f32.mrf.mxu1 }
 0x231   : > { %v866_v9 = vadd.f32 %v1338_v7, %v2024_v43 }
 0x232   : > { %v1340_v10 = vpop.f32.mrf.mxu1 }
 0x233   : > { %v914_v12 = vmax.f32 %v866_v9, 0.0  ;;  %v1341_v13 = vadd.f32 %v1340_v10, %v1339_v8 }
 0x234   : > { %v1342_v14 = vpop.f32.mrf.mxu1 }
 0x235   : > { %v927_v15 = vpack.c.bf16 %v914_v12, %v913_v11  ;;  %v871_v17 = vadd.f32 %v1341_v13, %v2024_v43 }
 0x236   : > { %v1343_v16 = vpop.f32.mrf.mxu1 }
 0x237   : > { %v1344_v18 = vadd.f32 %v1343_v16, %v1342_v14  ;;  %1405 = vmatprep.mubr.bf16.mxu0 %v927_v15  ;;  %v915_v22 = vmax.f32 %v871_v17, 0.0 }
 0x238   : > { %v1345_v19 = vpop.f32.mrf.mxu1 }
 0x239   : > { %v874_v20 = vadd.f32 %v1344_v18, %v2024_v43 }
 0x23a   : > { %v1346_v21 = vpop.f32.mrf.mxu1 }
 0x23b   : > { %v916_v23 = vmax.f32 %v874_v20, 0.0  ;;  %v1347_v24 = vadd.f32 %v1346_v21, %v1345_v19 }
 0x23c   : > { %v1348_v25 = vpop.f32.mrf.mxu1 }
 0x23d   : > { %v928_v26 = vpack.c.bf16 %v916_v23, %v915_v22  ;;  %v879_v28 = vadd.f32 %v1347_v24, %v2024_v43 }
 0x23e   : > { %v1349_v27 = vpop.f32.mrf.mxu1 }
 0x23f   : > { %v1350_v29 = vadd.f32 %v1349_v27, %v1348_v25  ;;  %1406 = vmatmul.mubr.bf16.gmra.mxu0 %v928_v26  ;;  %v917_v33 = vmax.f32 %v879_v28, 0.0 }
 0x240   : > { %v1351_v30 = vpop.f32.mrf.mxu1 }
 0x241   : > { %v882_v31 = vadd.f32 %v1350_v29, %v2024_v43 }
 0x242   : > { %v1352_v32 = vpop.f32.mrf.mxu1 }
 0x243   : > { %v918_v34 = vmax.f32 %v882_v31, 0.0  ;;  %v1353_v35 = vadd.f32 %v1352_v32, %v1351_v30 }
 0x244   : > { %v1354_v36 = vpop.f32.mrf.mxu1 }
 0x245   : > { %v929_v37 = vpack.c.bf16 %v918_v34, %v917_v33  ;;  %v887_v51 = vadd.f32 %v1353_v35, %v2024_v43 }
 0x246   : > { %v1355_v38 = vpop.f32.mrf.mxu1 }
 0x247   : > { %v1356_v50 = vadd.f32 %v1355_v38, %v1354_v36  ;;  %1409 = vmatprep.mubr.bf16.mxu1 %v929_v37  ;;  %v919_v42 = vmax.f32 %v887_v51, 0.0 }
 0x248   : > { %v1357_v39 = vpop.f32.mrf.mxu1 }
 0x249   : > { %v890_v40 = vadd.f32 %v1356_v50, %v2024_v43 }
 0x24a   : > { %v1358_v41 = vpop.f32.mrf.mxu1 }
 0x24b   : > { %v920_v44 = vmax.f32 %v890_v40, 0.0  ;;  %v1359_v45 = vadd.f32 %v1358_v41, %v1357_v39 }
 0x24c   : > { %v1360_v46 = vpop.f32.mrf.mxu1 }
 0x24d   : > { %v930_v47 = vpack.c.bf16 %v920_v44, %v919_v42  ;;  %v895_v49 = vadd.f32 %v1359_v45, %v2024_v43 }
 0x24e   : > { %v1361_v48 = vpop.f32.mrf.mxu1 }
 0x24f   : > { %v1362_v52 = vadd.f32 %v1361_v48, %v1360_v46  ;;  %1410 = vmatmul.mubr.bf16.vlgmr.msra.gmra.mxu1 %v930_v47  ;;  %v921_v56 = vmax.f32 %v895_v49, 0.0 }
 0x250   : > { %v1363_v53 = vpop.f32.mrf.mxu1 }
 0x251   : > { %v898_v54 = vadd.f32 %v1362_v52, %v2024_v43 }
 0x252   : > { %v1364_v55 = vpop.f32.mrf.mxu1 }
 0x253   : > { %v922_v57 = vmax.f32 %v898_v54, 0.0  ;;  %v1365_v58 = vadd.f32 %v1364_v55, %v1363_v53 }
 0x254   : > { %v1366_v59 = vpop.f32.mrf.mxu1 }
 0x255   : > { %v931_v60 = vpack.c.bf16 %v922_v57, %v921_v56  ;;  %v903_v62 = vadd.f32 %v1365_v58, %v2024_v43 }
 0x256   : > { %v1367_v61 = vpop.f32.mrf.mxu1 }
 0x257   : > { %v1368_v63 = vadd.f32 %v1367_v61, %v1366_v59  ;;  %1413 = vmatprep.mubr.bf16.mxu1 %v931_v60  ;;  %v923_v1 = vmax.f32 %v903_v62, 0.0 }
 0x259   : > { %v906_v0 = vadd.f32 %v1368_v63, %v2024_v43 }
 0x25b   : > { %v924_v2 = vmax.f32 %v906_v0, 0.0 }
 0x25d   : > { %v932_v3 = vpack.c.bf16 %v924_v2, %v923_v1 }
 0x25f   : > { %1414 = vmatmul.mubr.bf16.gmra.mxu1 %v932_v3 }
 0x2ef   : > { %v1403_v5 = vpop.f32.mrf.mxu0 }
 0x2f0   : > { %v1047_v6 = vadd.f32 %v1403_v5, %v1289_v4 }
 0x2f1   : > { %v1038_v7 = vpop.f32.mrf.mxu0 }
 0x2f2   : > { %1103 = vst [vmem:[%s2046_s20 + $0x10] sm:$0xff] %v1047_v6  ;;  %v1039_v43 = vadd.f32 %v1289_v4, %v1038_v7 }
 0x2f3   : > { %v1404_v8 = vpop.f32.mrf.mxu0 }
 0x2f4   : > { %1101 = vst [vmem:[%s2046_s20] sm:$0xff] %v1039_v43  ;;  %v1050_v9 = vadd.f32 %v1404_v8, %v1289_v4 }
 0x2f5   : > { %v1041_v10 = vpop.f32.mrf.mxu0 }
 0x2f6   : > { %1104 = vst [vmem:[%s2046_s20 + $0x18] sm:$0xff] %v1050_v9  ;;  %v1042_v11 = vadd.f32 %v1289_v4, %v1041_v10 }
 0x2f8   : > { %1102 = vst [vmem:[%s2046_s20 + $0x8] sm:$0xff] %v1042_v11 }
 0x2ff   : > { %v1407_v12 = vpop.f32.mrf.mxu0 }
 0x300   : > { %v1063_v13 = vadd.f32 %v1407_v12, %v1289_v4 }
 0x301   : > { %v1054_v14 = vpop.f32.mrf.mxu0 }
 0x302   : > { %1107 = vst [vmem:[%s2046_s20 + $0x30] sm:$0xff] %v1063_v13  ;;  %v1055_v15 = vadd.f32 %v1289_v4, %v1054_v14 }
 0x303   : > { %v1408_v16 = vpop.f32.mrf.mxu0 }
 0x304   : > { %1105 = vst [vmem:[%s2046_s20 + $0x20] sm:$0xff] %v1055_v15  ;;  %v1066_v17 = vadd.f32 %v1408_v16, %v1289_v4 }
 0x305   : > { %v1057_v18 = vpop.f32.mrf.mxu0 }
 0x306   : > { %1108 = vst [vmem:[%s2046_s20 + $0x38] sm:$0xff] %v1066_v17  ;;  %v1058_v19 = vadd.f32 %v1289_v4, %v1057_v18 }
 0x308   : > { %1106 = vst [vmem:[%s2046_s20 + $0x28] sm:$0xff] %v1058_v19 }
 0x30f   : > { %v1411_v20 = vpop.f32.mrf.mxu1 }
 0x310   : > { %v1079_v21 = vadd.f32 %v1411_v20, %v1289_v4 }
 0x311   : > { %v1070_v22 = vpop.f32.mrf.mxu1 }
 0x312   : > { %1111 = vst [vmem:[%s2046_s20 + $0x50] sm:$0xff] %v1079_v21  ;;  %v1071_v23 = vadd.f32 %v1289_v4, %v1070_v22 }
 0x313   : > { %v1412_v24 = vpop.f32.mrf.mxu1 }
 0x314   : > { %1109 = vst [vmem:[%s2046_s20 + $0x40] sm:$0xff] %v1071_v23  ;;  %v1082_v25 = vadd.f32 %v1412_v24, %v1289_v4 }
 0x315   : > { %v1073_v26 = vpop.f32.mrf.mxu1 }
 0x316   : > { %1112 = vst [vmem:[%s2046_s20 + $0x58] sm:$0xff] %v1082_v25  ;;  %v1074_v27 = vadd.f32 %v1289_v4, %v1073_v26 }
 0x318   : > { %1110 = vst [vmem:[%s2046_s20 + $0x48] sm:$0xff] %v1074_v27 }
 0x31f   : > { %v1415_v28 = vpop.f32.mrf.mxu1 }
 0x320   : > { %v1095_v29 = vadd.f32 %v1415_v28, %v1289_v4 }
 0x321   : > { %v1086_v30 = vpop.f32.mrf.mxu1 }
 0x322   : > { %1115 = vst [vmem:[%s2046_s20 + $0x70] sm:$0xff] %v1095_v29  ;;  %v1087_v31 = vadd.f32 %v1289_v4, %v1086_v30 }
 0x323   : > { %v1416_v32 = vpop.f32.mrf.mxu1 }
 0x324   : > { %1113 = vst [vmem:[%s2046_s20 + $0x60] sm:$0xff] %v1087_v31  ;;  %v1098_v33 = vadd.f32 %v1416_v32, %v1289_v4 }
 0x325   : > { %v1089_v34 = vpop.f32.mrf.mxu1 }
 0x326   : > { %1116 = vst [vmem:[%s2046_s20 + $0x78] sm:$0xff] %v1098_v33  ;;  %v1090_v35 = vadd.f32 %v1289_v4, %v1089_v34 }
 0x328   : > { %1114 = vst [vmem:[%s2046_s20 + $0x68] sm:$0xff] %v1090_v35 }
 0x329   : > { %1692 = shalt.err (!%p1689_p9)
}
 0x32a   : > { %s1693_s16 = scalar_lea.hbm %s2067_s29, 2048  ;;  %s1697_s14 = scalar_lea.hbm %s2120_s7, 8192 }
 0x32b   : > { %p1694_p7 = scmp.ne.s32.totalorder %s2067_s29, %s1693_s16  ;;  %p1698_p6 = scmp.lt.s32.totalorder %s2067_s29, %s2120_s7 }
 0x32c   : > { %p1699_p10 = scmp.lt.s32.totalorder %s1697_s14, %s1693_s16 }
 0x32d   : > { %p1695_p4 = pnand %p1694_p7, %p2144_p13 }
 0x32e   : > { %p1700_p12 = por %p1699_p10, %p1698_p6 }
 0x32f   : > { %p1696_p8 = pneg %p1695_p4 }
 0x331   : > { %p1701_p11 = pnand %p1700_p12, %p1696_p8 }
 0x333   : > { %1704 = shalt.err (!%p1701_p11)
}
 0x334   : > { %s1763_s10 = smov 128   ;;  %s1764_s1 = smov 8  }
 0x335   : > { %1447 = dma.vmem_to_hbm [thread:$0]  (%p2144_p13), %s2069_s21, 2048, %s2067_s29, %s1118_s15, %s1763_s10, %s1763_s10, %s1764_s1  }
 0x336 PF: > { %p1474_p3 = scmp.ge.s32.totalorder %s1751_s27, 2  ;;  %s1146_s28 = sand.u32 1, %s1739_s24  }
 0x337   : > { %p2145_p0 = scmp.ne.s32.totalorder %s2129_s8, 0  ;;  %s1147_s30 = scalar_lea.sflag [#allocation4], %s1146_s28 }
 0x339   : > { %p1464_p1 = pnand %p1474_p3, %p2145_p0 }
 0x33b   : > { %p1465_p2 = pneg %p1464_p1 }
 0x33d   : > { %1734 = dma.done.wait (%p1465_p2), %s1147_s30, 2048  }
 0x33e   : > { %1736 = vsyncadd (%p1465_p2), %s1147_s30, 4294965248  ;;  %p22_p5 = scmp.ge.s32.totalorder %s1879_s13, 6   ;;  %s2146_s24 = smov %s1743_s25 }
 0x33f   : > { %s2147_s25 = smov %s1747_s26  ;;  %s2148_s26 = smov %s1900_s18 }
 0x340   : > { %s2149_s27 = smov %s1879_s13  ;;  %24 = sbr.rel (!%p22_p5) target bundleno = 9 (0x9), region = 105 }
 0x345   :  { %1152 = vsyncpa [#allocation3], 1 }
 0x346   :  { %1154 = vsyncpa [#allocation3 + $0x1], 1 }
 0x347   :  { %1155 = vsyncpa [#allocation6], 1 }
 0x348   :  { %1156 = vsyncpa [#allocation9], 1 }
 0x349   :  { %1157 = vsyncpa [#allocation4], 1 }
 0x34a   :  { %1159 = vsyncpa [#allocation4 + $0x1], 1 }

</bundles_post_ra>
